<compile_context>
chip_gen: v6e
topology: v6e:2x2x1
jax: 0.10.0
libtpu: 0.0.40
codegen_flags: <defaults>
</compile_context>

<pallas_src>
import functools

import jax
import jax.numpy as jnp
from jax.experimental import pallas as pl
from jax.experimental.pallas import tpu as pltpu

VMEM_LIMIT_BYTES = 48 * 1024 * 1024   # headroom even on v7x (64 MiB physical per TC)


def _pick_spatial_tile():
    """Spatial (lane-axis) tile width in columns, per TPU generation."""
    try:
        vmem = pltpu.get_tpu_info().vmem_capacity_bytes
    except Exception:
        vmem = 64 * 1024 * 1024
    # v5e / v6e: 128 MiB VMEM -> 4096-column f32 tiles; v7x: 64 MiB -> 2048.
    return 4096 if vmem > 64 * 1024 * 1024 else 2048


# ---------------------------------------------------------------------------
# Pass 1: per batch, accumulate the masked + normalized per-head context over
# spatial tiles (flash-style running max/sum for the spatial k softmax) and emit
#     W2[c, d] = sum_e wout[c, e] * ctx_scaled[d, e]            -> (C, HD)
# so that pass 2 only needs  y = W2 @ softmax_head(q) + b.
# ---------------------------------------------------------------------------
def _ctx_w2_kernel(x_ref, wkv_ref, wout_ref, mask_ref, w2_ref,
                   ctx_acc, m_acc, s_acc, *, hidden, tile, hw_valid, mxu_dtype):
    j = pl.program_id(1)

    @pl.when(j == 0)
    def _():
        ctx_acc[...] = jnp.zeros_like(ctx_acc)
        s_acc[...] = jnp.zeros_like(s_acc)
        m_acc[...] = jnp.full_like(m_acc, -jnp.inf)

    x = x_ref[0]                                            # (C, T) channel-major
    dn_c0 = (((0,), (0,)), ((), ()))                        # contract axis 0 of both
    # fused k/v projection: one MXU weight push instead of two (K = C is shallow)
    kv = jax.lax.dot_general(wkv_ref[...].astype(mxu_dtype), x.astype(mxu_dtype),
                             dn_c0, preferred_element_type=jnp.float32)   # (2HD, T)
    k = kv[:hidden]
    v = kv[hidden:]

    # Running per-row max / sum for the spatial softmax of k.
    m_prev = m_acc[...]
    m_new = jnp.maximum(m_prev, jnp.max(k, axis=1, keepdims=True))        # (HD, 1)
    alpha = jnp.exp(m_prev - m_new)
    ek = jnp.exp(k - m_new)                                               # (HD, T)
    # TODO(synk): on v6e/v7x this exp can run in bf16 on the EUP for ~2x throughput;
    # kept f32 to preserve f32-exact module semantics (and v5e has no bf16 EUP).
    if hw_valid is not None:                                # static: only when padded
        col = j * tile + jax.lax.broadcasted_iota(jnp.int32, (1, tile), 1)
        ek = jnp.where(col < hw_valid, ek, 0.0)
    s_acc[...] = alpha * s_acc[...] + jnp.sum(ek, axis=1, keepdims=True)

    dn_c1 = (((1,), (1,)), ((), ()))                        # contract axis 1 of both
    ctx_acc[...] = alpha * ctx_acc[...] + jax.lax.dot_general(
        ek.astype(mxu_dtype), v.astype(mxu_dtype), dn_c1,
        preferred_element_type=jnp.float32)                 # (HD, HD): [d, e]
    m_acc[...] = m_new

    @pl.when(j == pl.num_programs(1) - 1)
    def _():
        # Fold 1/rowsum(k), the q scale, 1/(H*W) and the block-diagonal head mask into
        # the tiny (HD, HD) context, then contract with the to_out conv weight.
        ctx_scaled = (ctx_acc[...] * pl.reciprocal(s_acc[...], approx=True)) * mask_ref[...]
        w2_ref[0] = jax.lax.dot_general(
            wout_ref[...], ctx_scaled, (((1,), (1,)), ((), ())),
            preferred_element_type=jnp.float32)             # (C, HD)


# ---------------------------------------------------------------------------
# Pass 2: per (batch, spatial tile) -- fully parallel given W2.
# q projection, per-head softmax over dim_head, y = W2 @ q + b, LayerNorm over C.
# ---------------------------------------------------------------------------
def _out_kernel(x_ref, wq_ref, w2_ref, bout_ref, g_ref, out_ref,
                *, heads, dim_head, eps, mxu_dtype):
    x = x_ref[0]                                            # (C, T)
    hd = heads * dim_head
    dn_c0 = (((0,), (0,)), ((), ()))
    q = jax.lax.dot_general(wq_ref[...].astype(mxu_dtype), x.astype(mxu_dtype),
                            dn_c0, preferred_element_type=jnp.float32)    # (HD, T)
    t = q.shape[-1]

    # Per-head softmax over the dim_head channels: sublane-aligned 3-D view (no
    # concatenate copy), EUP reciprocal instead of a full-width divide.
    q3 = q.reshape(heads, dim_head, t)
    qe = jnp.exp(q3 - jnp.max(q3, axis=1, keepdims=True))
    qn = qe * pl.reciprocal(jnp.sum(qe, axis=1, keepdims=True), approx=True)
    qn = qn.reshape(hd, t)

    # to_out 1x1 conv (+bias) with the context already folded into W2, then LayerNorm
    # over channels (biased variance, eps = 1e-5) scaled by g.
    y = jnp.dot(w2_ref[0].astype(mxu_dtype), qn.astype(mxu_dtype),
                preferred_element_type=jnp.float32) + bout_ref[...]       # (C, T)
    mean = jnp.mean(y, axis=0, keepdims=True)
    yc = y - mean
    var = jnp.mean(yc * yc, axis=0, keepdims=True)
    out_ref[0] = yc * jax.lax.rsqrt(var + eps) * g_ref[...]


# ---------------------------------------------------------------------------
# Wrapper
# ---------------------------------------------------------------------------
def linear_attention_pallas(x_nchw, params, *, heads=4, dim_head=32,
                            spatial_tile=None, mxu_dtype=jnp.float32):
    B, C, H, W = x_nchw.shape
    HW = H * W
    HD = heads * dim_head

    if spatial_tile is None:
        spatial_tile = _pick_spatial_tile()
    hw_lane = pl.cdiv(HW, 128) * 128        # lane-dense, unmasked stores
    T = min(spatial_tile, hw_lane)
    NT = pl.cdiv(hw_lane, T)
    HWp = NT * T

    x = x_nchw.reshape(B, C, HW).astype(jnp.float32)   # channel-major; reshape only
    if HWp != HW:
        x = jnp.pad(x, ((0, 0), (0, 0), (0, HWp - HW)))

    wqkv = params["wqkv"]                                  # (3*HD, C) Conv2d(dim,3HD,1) weight
    wq = jnp.asarray(wqkv[:HD].T, jnp.float32)             # (C, HD) lane-dense
    wkv = jnp.asarray(wqkv[HD:].T, jnp.float32)            # (C, 2*HD): [k | v]
    wout = jnp.asarray(params["wout"], jnp.float32)        # (C, HD)
    bout = params["bout"].reshape(C, 1).astype(jnp.float32)
    g = params["g"].reshape(C, 1).astype(jnp.float32)

    # Block-diagonal head mask with the q scale and the 1/(H*W) v-normalization folded in.
    head_id = jnp.arange(HD, dtype=jnp.int32) // dim_head
    mask = jnp.where(head_id[:, None] == head_id[None, :],
                     jnp.float32(float(dim_head) ** -0.5 / HW), jnp.float32(0.0))

    hw_valid = HW if HWp != HW else None

    ctx_kernel = functools.partial(_ctx_w2_kernel, hidden=HD, tile=T,
                                   hw_valid=hw_valid, mxu_dtype=mxu_dtype)
    out_kernel = functools.partial(_out_kernel, heads=heads, dim_head=dim_head,
                                   eps=1e-5, mxu_dtype=mxu_dtype)

    cost_ctx = pl.CostEstimate(
        flops=B * NT * (2 * C * 2 * HD * T + 2 * HD * HD * T) + B * 2 * C * HD * HD,
        transcendentals=B * (HD * HWp + NT * 2 * HD),
        bytes_accessed=4 * (B * C * HWp + C * 3 * HD + HD * HD + B * C * HD))
    cost_out = pl.CostEstimate(
        flops=B * NT * 4 * C * HD * T,
        transcendentals=B * HD * HWp,
        bytes_accessed=4 * (2 * B * C * HWp + C * HD + B * C * HD + 2 * C))

    # Pass 1: masked/normalized context folded into the output weight -> W2 (B, C, HD).
    w2 = pl.pallas_call(
        ctx_kernel,
        out_shape=jax.ShapeDtypeStruct((B, C, HD), jnp.float32),
        grid=(B, NT),
        in_specs=[
            pl.BlockSpec((1, C, T), lambda b, j: (b, 0, j)),
            pl.BlockSpec((C, 2 * HD), lambda b, j: (0, 0)),
            pl.BlockSpec((C, HD), lambda b, j: (0, 0)),
            pl.BlockSpec((HD, HD), lambda b, j: (0, 0)),
        ],
        out_specs=pl.BlockSpec((1, C, HD), lambda b, j: (b, 0, 0)),
        scratch_shapes=[
            pltpu.VMEM((HD, HD), jnp.float32),   # running context accumulator
            pltpu.VMEM((HD, 1), jnp.float32),    # running row-max of k
            pltpu.VMEM((HD, 1), jnp.float32),    # running row-sum of exp(k - max)
        ],
        compiler_params=pltpu.CompilerParams(
            dimension_semantics=("parallel", "arbitrary"),
            vmem_limit_bytes=VMEM_LIMIT_BYTES),
        cost_estimate=cost_ctx,
    )(x, wkv, wout, mask)

    # Pass 2: per-tile q softmax, y = W2 @ q + b, LayerNorm.  Fully parallel grid.
    out = pl.pallas_call(
        out_kernel,
        out_shape=jax.ShapeDtypeStruct((B, C, HWp), jnp.float32),
        grid=(B, NT),
        in_specs=[
            pl.BlockSpec((1, C, T), lambda b, j: (b, 0, j)),
            pl.BlockSpec((C, HD), lambda b, j: (0, 0)),
            pl.BlockSpec((1, C, HD), lambda b, j: (b, 0, 0)),
            pl.BlockSpec((C, 1), lambda b, j: (0, 0)),
            pl.BlockSpec((C, 1), lambda b, j: (0, 0)),
        ],
        out_specs=pl.BlockSpec((1, C, T), lambda b, j: (b, 0, j)),
        compiler_params=pltpu.CompilerParams(
            dimension_semantics=("parallel", "parallel"),   # keeps both v7x TCs busy at B=1
            vmem_limit_bytes=VMEM_LIMIT_BYTES),
        cost_estimate=cost_out,
    )(x, wq, w2, bout, g)

    if HWp != HW:
        out = out[:, :, :HW]
    return out.reshape(B, C, H, W)


# ---------------------------------------------------------------------------
# Deterministic parameter construction (shapes per LinearAttention.__init__)
# ---------------------------------------------------------------------------
def make_params(key, dim, heads=4, dim_head=32):
    HD = heads * dim_head
    k1, k2, k3, k4 = jax.random.split(key, 4)
    return {
        "wqkv": 0.2 * jax.random.normal(k1, (3 * HD, dim), jnp.float32),  # to_qkv (no bias)
        "wout": 0.2 * jax.random.normal(k2, (dim, HD), jnp.float32),      # to_out conv
        "bout": 0.2 * jax.random.normal(k3, (dim,), jnp.float32),
        "g": 1.0 + 0.1 * jax.random.normal(k4, (dim,), jnp.float32),      # LayerNorm g
    }


# ---------------------------------------------------------------------------
# Pure-JAX reference (mirrors the PyTorch forward) for validation
# ---------------------------------------------------------------------------
def linear_attention_ref(x, params, *, heads=4, dim_head=32):
    B, C, H, W = x.shape
    HW = H * W
    HD = heads * dim_head
    xr = x.reshape(B, C, HW)

    qkv = jnp.einsum('oc,bcn->bon', params["wqkv"], xr)      # (B, 3HD, HW)
    q, k, v = qkv[:, :HD], qkv[:, HD:2 * HD], qkv[:, 2 * HD:]
    q = q.reshape(B, heads, dim_head, HW)
    k = k.reshape(B, heads, dim_head, HW)
    v = v.reshape(B, heads, dim_head, HW)

    q = jax.nn.softmax(q, axis=-2) * (dim_head ** -0.5)
    k = jax.nn.softmax(k, axis=-1)
    v = v / HW

    ctx = jnp.einsum('bhdn,bhen->bhde', k, v)
    out = jnp.einsum('bhde,bhdn->bhen', ctx, q).reshape(B, HD, HW)

    y = jnp.einsum('oc,bcn->bon', params["wout"], out) + params["bout"].reshape(1, C, 1)
    mean = y.mean(axis=1, keepdims=True)
    var = ((y - mean) ** 2).mean(axis=1, keepdims=True)
    y = (y - mean) * jax.lax.rsqrt(var + 1e-5) * params["g"].reshape(1, C, 1)
    return y.reshape(B, C, H, W)


if __name__ == "__main__":
    key = jax.random.PRNGKey(0)
    HEADS, DIM_HEAD = 4, 32            # hidden_dim = 128 (module defaults)

    def check(x, params, **kw):
        out = jax.block_until_ready(
            linear_attention_pallas(x, params, heads=HEADS, dim_head=DIM_HEAD, **kw))
        ref = linear_attention_ref(x, params, heads=HEADS, dim_head=DIM_HEAD)
        err = float(jnp.max(jnp.abs(out - ref)))
        assert out.shape == x.shape
        assert err < 2e-3, f"mismatch vs reference, max abs err = {err}"
        return err

    k_x, k_p, k_x2 = jax.random.split(key, 3)
    params = make_params(k_p, 32, HEADS, DIM_HEAD)

    x = jax.random.normal(k_x, (2, 32, 16, 16), jnp.float32)
    check(x, params)                      # single spatial tile path
    check(x, params, spatial_tile=128)    # multi-tile flash-style accumulation path

    x2 = jax.random.normal(k_x2, (1, 32, 10, 10), jnp.float32)
    check(x2, params)                     # lane padding + tail masking path

    print("KERNEL_OK")
</pallas_src>

<mosaic_0001>
module attributes {stable_mosaic.version = 11 : i64} {
  func.func @_ctx_w2_kernel(%arg0: i32, %arg1: i32, %arg2: memref<1x32x256xf32, #tpu.memory_space<vmem>>, %arg3: memref<32x256xf32, #tpu.memory_space<vmem>>, %arg4: memref<32x128xf32, #tpu.memory_space<vmem>>, %arg5: memref<128x128xf32, #tpu.memory_space<vmem>>, %arg6: memref<1x32x128xf32, #tpu.memory_space<vmem>>, %arg7: memref<128x128xf32, #tpu.memory_space<vmem>>, %arg8: memref<128x1xf32, #tpu.memory_space<vmem>>, %arg9: memref<128x1xf32, #tpu.memory_space<vmem>>) attributes {dimension_semantics = [#tpu.dimension_semantics<parallel>, #tpu.dimension_semantics<arbitrary>], iteration_bounds = array<i64: 2, 1>, scalar_prefetch = 0 : i64, scratch_operands = 3 : i64, tpu.core_type = #tpu.core_type<tc>, window_params = [{transform_indices = @transform_0, window_bounds = array<i64: 1, 32, 256>}, {pipeline_mode = #tpu.pipeline_mode<synchronous>, transform_indices = @transform_1, window_bounds = array<i64: 32, 256>}, {pipeline_mode = #tpu.pipeline_mode<synchronous>, transform_indices = @transform_2, window_bounds = array<i64: 32, 128>}, {pipeline_mode = #tpu.pipeline_mode<synchronous>, transform_indices = @transform_3, window_bounds = array<i64: 128, 128>}, {transform_indices = @transform_4, window_bounds = array<i64: 1, 32, 128>}]} {
    %c0_i32 = arith.constant 0 : i32
    %0 = arith.cmpi eq, %arg1, %c0_i32 : i32
    %1 = arith.extui %0 : i1 to i32
    %c0_i32_0 = arith.constant 0 : i32
    %2 = arith.cmpi ne, %1, %c0_i32_0 : i32
    scf.if %2 {
      %cst_22 = arith.constant 0.000000e+00 : f32
      %34 = vector.broadcast %cst_22 : f32 to vector<128x128xf32>
      %c0_23 = arith.constant 0 : index
      %c0_24 = arith.constant 0 : index
      %35 = vector.load %arg7[%c0_23, %c0_24] : memref<128x128xf32, #tpu.memory_space<vmem>>, vector<128x128xf32>
      tpu.vector_store %arg7[%c0_23, %c0_24], %34 {strides = array<i32>} : memref<128x128xf32, #tpu.memory_space<vmem>>, vector<128x128xf32>,
      %cst_25 = arith.constant 0.000000e+00 : f32
      %36 = vector.broadcast %cst_25 : f32 to vector<128x1xf32>
      %c0_26 = arith.constant 0 : index
      %c0_27 = arith.constant 0 : index
      %37 = vector.load %arg9[%c0_26, %c0_27] : memref<128x1xf32, #tpu.memory_space<vmem>>, vector<128x1xf32>
      tpu.vector_store %arg9[%c0_26, %c0_27], %36 {strides = array<i32>} : memref<128x1xf32, #tpu.memory_space<vmem>>, vector<128x1xf32>,
      %cst_28 = arith.constant 0xFF800000 : f32
      %38 = vector.broadcast %cst_28 : f32 to vector<128x1xf32>
      %c0_29 = arith.constant 0 : index
      %c0_30 = arith.constant 0 : index
      %39 = vector.load %arg8[%c0_29, %c0_30] : memref<128x1xf32, #tpu.memory_space<vmem>>, vector<128x1xf32>
      tpu.vector_store %arg8[%c0_29, %c0_30], %38 {strides = array<i32>} : memref<128x1xf32, #tpu.memory_space<vmem>>, vector<128x1xf32>,
    } else {
    }
    %c0 = arith.constant 0 : index
    %c0_1 = arith.constant 0 : index
    %c0_2 = arith.constant 0 : index
    %3 = vector.load %arg2[%c0, %c0_1, %c0_2] : memref<1x32x256xf32, #tpu.memory_space<vmem>>, vector<1x32x256xf32>
    %4 = vector.shape_cast %3 : vector<1x32x256xf32> to vector<32x256xf32>
    %c0_3 = arith.constant 0 : index
    %c0_4 = arith.constant 0 : index
    %5 = vector.load %arg3[%c0_3, %c0_4] : memref<32x256xf32, #tpu.memory_space<vmem>>, vector<32x256xf32>
    %cst = arith.constant dense<0.000000e+00> : vector<256x256xf32>
    %6 = tpu.matmul %5, %4, %cst {dimension_numbers = #tpu.dot_dimension_numbers<[0], [0], [1], [1], [0, 1, 1, 1], [], []>} : vector<32x256xf32>, vector<32x256xf32>, vector<256x256xf32> -> vector<256x256xf32>
    %7 = vector.extract_strided_slice %6 {offsets = [0, 0], sizes = [128, 256], strides = [1, 1]} : vector<256x256xf32> to vector<128x256xf32>
    %8 = vector.extract_strided_slice %6 {offsets = [128, 0], sizes = [128, 256], strides = [1, 1]} : vector<256x256xf32> to vector<128x256xf32>
    %c0_5 = arith.constant 0 : index
    %c0_6 = arith.constant 0 : index
    %9 = vector.load %arg8[%c0_5, %c0_6] : memref<128x1xf32, #tpu.memory_space<vmem>>, vector<128x1xf32>
    %cst_7 = arith.constant dense<0xFF800000> : vector<128xf32>
    %10 = vector.multi_reduction <maximumf>, %7, %cst_7 [1] : vector<128x256xf32> to vector<128xf32>
    %11 = vector.shape_cast %10 : vector<128xf32> to vector<128x1xf32>
    %12 = arith.maximumf %9, %11 : vector<128x1xf32>
    %13 = arith.subf %9, %12 : vector<128x1xf32>
    %14 = math.exp %13 : vector<128x1xf32>
    %15 = vector.broadcast %12 : vector<128x1xf32> to vector<128x256xf32>
    %16 = arith.subf %7, %15 : vector<128x256xf32>
    %17 = math.exp %16 : vector<128x256xf32>
    %c0_8 = arith.constant 0 : index
    %c0_9 = arith.constant 0 : index
    %18 = vector.load %arg9[%c0_8, %c0_9] : memref<128x1xf32, #tpu.memory_space<vmem>>, vector<128x1xf32>
    %19 = arith.mulf %14, %18 : vector<128x1xf32>
    %cst_10 = arith.constant dense<0.000000e+00> : vector<128xf32>
    %20 = vector.multi_reduction <add>, %17, %cst_10 [1] : vector<128x256xf32> to vector<128xf32>
    %21 = vector.shape_cast %20 : vector<128xf32> to vector<128x1xf32>
    %22 = arith.addf %19, %21 : vector<128x1xf32>
    %c0_11 = arith.constant 0 : index
    %c0_12 = arith.constant 0 : index
    %23 = vector.load %arg9[%c0_11, %c0_12] : memref<128x1xf32, #tpu.memory_space<vmem>>, vector<128x1xf32>
    tpu.vector_store %arg9[%c0_11, %c0_12], %22 {strides = array<i32>} : memref<128x1xf32, #tpu.memory_space<vmem>>, vector<128x1xf32>,
    %c0_13 = arith.constant 0 : index
    %c0_14 = arith.constant 0 : index
    %24 = vector.load %arg7[%c0_13, %c0_14] : memref<128x128xf32, #tpu.memory_space<vmem>>, vector<128x128xf32>
    %25 = vector.broadcast %14 : vector<128x1xf32> to vector<128x128xf32>
    %26 = arith.mulf %25, %24 : vector<128x128xf32>
    %cst_15 = arith.constant dense<0.000000e+00> : vector<128x128xf32>
    %27 = tpu.matmul %17, %8, %cst_15 {dimension_numbers = #tpu.dot_dimension_numbers<[1], [1], [0], [0], [0, 0, 1, 0], [], []>} : vector<128x256xf32>, vector<128x256xf32>, vector<128x128xf32> -> vector<128x128xf32>
    %28 = arith.addf %26, %27 : vector<128x128xf32>
    %c0_16 = arith.constant 0 : index
    %c0_17 = arith.constant 0 : index
    %29 = vector.load %arg7[%c0_16, %c0_17] : memref<128x128xf32, #tpu.memory_space<vmem>>, vector<128x128xf32>
    tpu.vector_store %arg7[%c0_16, %c0_17], %28 {strides = array<i32>} : memref<128x128xf32, #tpu.memory_space<vmem>>, vector<128x128xf32>,
    %c0_18 = arith.constant 0 : index
    %c0_19 = arith.constant 0 : index
    %30 = vector.load %arg8[%c0_18, %c0_19] : memref<128x1xf32, #tpu.memory_space<vmem>>, vector<128x1xf32>
    tpu.vector_store %arg8[%c0_18, %c0_19], %12 {strides = array<i32>} : memref<128x1xf32, #tpu.memory_space<vmem>>, vector<128x1xf32>,
    %c0_i32_20 = arith.constant 0 : i32
    %31 = arith.cmpi eq, %arg1, %c0_i32_20 : i32
    %32 = arith.extui %31 : i1 to i32
    %c0_i32_21 = arith.constant 0 : i32
    %33 = arith.cmpi ne, %32, %c0_i32_21 : i32
    scf.if %33 {
      %c0_22 = arith.constant 0 : index
      %c0_23 = arith.constant 0 : index
      %34 = vector.load %arg7[%c0_22, %c0_23] : memref<128x128xf32, #tpu.memory_space<vmem>>, vector<128x128xf32>
      %c0_24 = arith.constant 0 : index
      %c0_25 = arith.constant 0 : index
      %35 = vector.load %arg9[%c0_24, %c0_25] : memref<128x1xf32, #tpu.memory_space<vmem>>, vector<128x1xf32>
      %36 = tpu.reciprocal %35 {approx = true} : vector<128x1xf32> -> vector<128x1xf32>
      %37 = vector.broadcast %36 : vector<128x1xf32> to vector<128x128xf32>
      %38 = arith.mulf %34, %37 : vector<128x128xf32>
      %c0_26 = arith.constant 0 : index
      %c0_27 = arith.constant 0 : index
      %39 = vector.load %arg5[%c0_26, %c0_27] : memref<128x128xf32, #tpu.memory_space<vmem>>, vector<128x128xf32>
      %40 = arith.mulf %38, %39 : vector<128x128xf32>
      %c0_28 = arith.constant 0 : index
      %c0_29 = arith.constant 0 : index
      %41 = vector.load %arg4[%c0_28, %c0_29] : memref<32x128xf32, #tpu.memory_space<vmem>>, vector<32x128xf32>
      %cst_30 = arith.constant dense<0.000000e+00> : vector<32x128xf32>
      %42 = tpu.matmul %41, %40, %cst_30 {dimension_numbers = #tpu.dot_dimension_numbers<[1], [1], [0], [0], [0, 0, 1, 0], [], []>} : vector<32x128xf32>, vector<128x128xf32>, vector<32x128xf32> -> vector<32x128xf32>
      %c0_31 = arith.constant 0 : index
      %c0_32 = arith.constant 0 : index
      %c0_33 = arith.constant 0 : index
      %43 = vector.load %arg6[%c0_31, %c0_32, %c0_33] : memref<1x32x128xf32, #tpu.memory_space<vmem>>, vector<1x32x128xf32>
      %44 = vector.shape_cast %43 : vector<1x32x128xf32> to vector<32x128xf32>
      %45 = vector.shape_cast %42 : vector<32x128xf32> to vector<1x32x128xf32>
      tpu.vector_store %arg6[%c0_31, %c0_32, %c0_33], %45 {strides = array<i32>} : memref<1x32x128xf32, #tpu.memory_space<vmem>>, vector<1x32x128xf32>,
    } else {
    }
    return
  }
  func.func @transform_0(%arg0: i32, %arg1: i32) -> (i32, i32, i32) {
    %c0_i32 = arith.constant 0 : i32
    %c0_i32_0 = arith.constant 0 : i32
    return %arg0, %c0_i32, %arg1 : i32, i32, i32
  }
  func.func @transform_1(%arg0: i32, %arg1: i32) -> (i32, i32) {
    %c0_i32 = arith.constant 0 : i32
    %c0_i32_0 = arith.constant 0 : i32
    %c0_i32_1 = arith.constant 0 : i32
    return %c0_i32, %c0_i32_0 : i32, i32
  }
  func.func @transform_2(%arg0: i32, %arg1: i32) -> (i32, i32) {
    %c0_i32 = arith.constant 0 : i32
    %c0_i32_0 = arith.constant 0 : i32
    %c0_i32_1 = arith.constant 0 : i32
    return %c0_i32, %c0_i32_0 : i32, i32
  }
  func.func @transform_3(%arg0: i32, %arg1: i32) -> (i32, i32) {
    %c0_i32 = arith.constant 0 : i32
    %c0_i32_0 = arith.constant 0 : i32
    %c0_i32_1 = arith.constant 0 : i32
    return %c0_i32, %c0_i32_0 : i32, i32
  }
  func.func @transform_4(%arg0: i32, %arg1: i32) -> (i32, i32, i32) {
    %c0_i32 = arith.constant 0 : i32
    %c0_i32_0 = arith.constant 0 : i32
    %c0_i32_1 = arith.constant 0 : i32
    return %arg0, %c0_i32, %c0_i32_0 : i32, i32, i32
  }
}

</mosaic_0001>

<bundles_post_ra>
// kernel: tpu_custom_call.1
= control target key start
LH: loop header
LB: loop body
LE: loop exit
PB: predicated region body
PF: predicated region fallthrough
CT: control target
= control target key end

     0   :  { %s3317_s0 = inlined_call_operand.hbm [shape: f32[2,32,256], index: 0, kind: input, shape index: {}]   ;;  %s3318_s1 = inlined_call_operand.hbm [shape: f32[32,256], index: 1, kind: input, shape index: {}]   ;;  %s3319_s2 = inlined_call_operand.hbm [shape: f32[32,128], index: 2, kind: input, shape index: {}]   ;;  %s3320_s3 = inlined_call_operand.hbm [shape: f32[128,128], index: 3, kind: input, shape index: {}]   ;;  %s3321_s4 = inlined_call_operand.hbm [shape: f32[2,32,128], index: 4, kind: output, shape index: {}]  }
   0x1   :  { %3338 = sst [smem:[#allocation31_spill]] %s3318_s1 }
   0x2   :  { %9 = vsyncpa [#allocation6], 0 }
   0x3   :  { %11 = vsyncpa [#allocation6 + $0x1], 0 }
   0x4   :  { %12 = vsyncpa [#allocation9], 0 }
   0x5   :  { %13 = vsyncpa [#allocation12], 0 }
   0x6   :  { %14 = vsyncpa [#allocation7], 0 }
   0x7   :  { %16 = vsyncpa [#allocation7 + $0x1], 0  ;;  %s2465_s15 = smov 0   ;;  %s2467_s16 = smov 0  }
   0x8   :  { %s2469_s17 = smov 0   ;;  %s2471_s18 = smov 0  }
   0x9   :  { %s2473_s19 = smov 0   ;;  %s2475_s20 = smov 0  }
   0xa LB: > { %s1885_s21 = sadd.s32 4294967295, %s2424_s20   ;;  %s1886_s22 = sadd.s32 4294967294, %s2424_s20   ;;  %s2424_s20 = sphi %s2475_s20, %s22_s20   ;;  %s2420_s19 = sphi %s2473_s19, %s3400_s19   ;;  %s2416_s18 = sphi %s2471_s18, %s3399_s18   ;;  %s2412_s17 = sphi %s2469_s17, %s3398_s17   ;;  %s2408_s16 = sphi %s2467_s16, %s3397_s16   ;;  %s2404_s15 = sphi %s2465_s15, %s3396_s15  }
   0xb   : > { %p56_p0 = scmp.ne.s32.totalorder %s2408_s16, %s2404_s15  ;;  %p2499_p1 = scmp.eq.s32.totalorder %s1885_s21, 0 }
   0xc   : > { %p2503_p2 = scmp.eq.s32.totalorder %s1885_s21, 1  ;;  %p149_p3 = scmp.eq.s32.totalorder %s1886_s22, 1 }
   0xd   : > { %p2509_p4 = por %p2499_p1, %p56_p0  ;;  %p1887_p5 = scmp.ge.s32.totalorder %s2424_s20, 1 }
   0xe   : > { %p2514_p6 = por %p149_p3, %p56_p0  ;;  %p156_p7 = scmp.lt.s32.totalorder %s2424_s20, 3 }
   0xf   : > { %s2426_s28 = smov [#allocation8]   ;;  %s2427_s5 = smov [#allocation10]  }
  0x10   : > { %s3342_s26 = scalar_select %p2514_p6, 1, 0 }
  0x11   : > { %p2519_p8 = pnand %p1887_p5, %p156_p7  ;;  %s168_s29 = sshll.u32 %s2426_s28, 4  ;;  %s169_s29 = int_to_ptr.vmem [resolvable:$true] %s168_s29 }
  0x12   : > { %s181_s6 = sshll.u32 %s2427_s5, 4  ;;  %s2241_s7 = scalar_lea.vmem %s169_s29, 1024  ;;  %s182_s6 = int_to_ptr.vmem [resolvable:$true] %s181_s6 }
  0x13   : > { %p2014_p9 = pneg %p2519_p8  ;;  %p2242_p13 = scmp.ne.s32.totalorder %s169_s29, %s2241_s7 }
  0x14   : > { %p2249_p5 = scmp.lt.s32.totalorder %s169_s29, %s169_s29  ;;  %p2250_p7 = scmp.lt.s32.totalorder %s2241_s7, %s2241_s7 }
  0x15   : > { %p2528_p11 = pnand %p2014_p9, %p2499_p1 }
  0x16   : > { %p2251_p10 = por %p2250_p7, %p2249_p5 }
  0x17   : > { %p2232_p12 = pneg %p2528_p11 }
  0x19   : > { %p2244_p0 = pnand %p2242_p13, %p2232_p12 }
  0x1b   : > { %p2245_p3 = pneg %p2244_p0 }
  0x1d   : > { %p2252_p9 = pnand %p2251_p10, %p2245_p3 }
  0x1f   : > { %2255 = shalt.err (!%p2252_p9)
}
  0x20   : > { %s3322_s8 = smov 256   ;;  %s3323_s9 = smov 16  }
  0x21   : > { %s3345_s1 = sld [smem:[#allocation31_spill]]  ;;  %s2267_s12 = scalar_lea.vmem %s182_s6, 512 }
  0x22   : > { %p2268_p13 = scmp.ne.s32.totalorder %s182_s6, %s2267_s12  ;;  %p2275_p10 = scmp.lt.s32.totalorder %s182_s6, %s182_s6 }
  0x23   : > { %p2276_p3 = scmp.lt.s32.totalorder %s2267_s12, %s2267_s12 }
  0x24   : > { %p2270_p0 = pnand %p2268_p13, %p2232_p12 }
  0x25   : > { %p2277_p7 = por %p2276_p3, %p2275_p10 }
  0x26   : > { %p2271_p5 = pneg %p2270_p0 }
  0x27   : > { %2017 = dma.hbm_to_vmem [thread:$0]  (!%p2528_p11), %s3345_s1, 1024, %s169_s29, [#allocation9], %s3322_s8, %s3322_s8, %s3323_s9  }
  0x28   : > { %p2278_p9 = pnand %p2277_p7, %p2271_p5 }
  0x2a   : > { %2281 = shalt.err (!%p2278_p9)
}
  0x2b   : > { %s2430_s13 = smov 128   ;;  %s2431_s14 = smov 8  }
  0x2c   : > { %2020 = dma.hbm_to_vmem [thread:$0]  (!%p2528_p11), %s3319_s2, 512, %s182_s6, [#allocation9], %s2430_s13, %s2430_s13, %s2431_s14  }
  0x2d   : > { %s2432_s28 = smov [#allocation11]  }
  0x2e   : > { %s194_s29 = sshll.u32 %s2432_s28, 4  ;;  %s195_s29 = int_to_ptr.vmem [resolvable:$true] %s194_s29 }
  0x2f   : > { %s2293_s5 = scalar_lea.vmem %s195_s29, 2048  ;;  %p2301_p5 = scmp.lt.s32.totalorder %s195_s29, %s195_s29 }
  0x30   : > { %p2294_p13 = scmp.ne.s32.totalorder %s195_s29, %s2293_s5  ;;  %p2302_p3 = scmp.lt.s32.totalorder %s2293_s5, %s2293_s5 }
  0x32   : > { %p2296_p0 = pnand %p2294_p13, %p2232_p12  ;;  %p2303_p7 = por %p2302_p3, %p2301_p5 }
  0x34   : > { %p2297_p10 = pneg %p2296_p0 }
  0x36   : > { %p2304_p9 = pnand %p2303_p7, %p2297_p10 }
  0x38   : > { %2307 = shalt.err (!%p2304_p9)
}
  0x39   : > { %2023 = dma.hbm_to_vmem [thread:$0]  (!%p2528_p11), %s3320_s3, 2048, %s195_s29, [#allocation12], %s2430_s13, %s2430_s13, %s2431_s14  }
  0x3a   : > { %s34_s6 = sadd.s32 1, %s2420_s19  ;;  %s43_s11 = sadd.s32 1, %s2412_s17 }
  0x3b   : > { %p36_p12 = scmp.ge.s32.totalorder %s34_s6, 2  ;;  %p50_p13 = scmp.ne.s32.totalorder %s2412_s17, %s2408_s16 }
  0x3c   : > { %p51_p0 = scmp.eq.s32.totalorder %s2424_s20, 0  ;;  %p2035_p11 = scmp.lt.s32.totalorder %s2424_s20, 2 }
  0x3d   : > { %s3402_s6 = smov (%p36_p12, %s34_s6), 0  ;;  %p2574_p5 = por %p2503_p2, %p50_p13 }
  0x3e   : > { %p2568_p10 = por %p51_p0, %p50_p13  ;;  %s38_s21 = ssub.s32 %s2420_s19, %s3402_s6 }
  0x3f   : > { %s3347_s12 = scalar_select %p2574_p5, 1, 0 }
  0x40   : > { %p41_p3 = scmp.eq.s32.totalorder %s38_s21, 0  ;;  %s208_s13 = sand.u32 1, %s2412_s17  }
  0x41   : > { %s1892_s14 = sshll.u32 %s208_s13, 6  ;;  %s1938_s28 = sshll.u32 %s2420_s19, 10 }
  0x42   : > { %s2583_s22 = scalar_select %p41_p3, %s2412_s17, %s43_s11  }
  0x43   : > { %s220_s7 = scalar_lea.hbm %s3317_s0, %s1938_s28  ;;  %s212_s10 = scalar_lea.vmem [#allocation5], %s1892_s14 }
  0x44   : > { %s221_s8 = sshll.u32 %s212_s10, 4  ;;  %p2591_p2 = pnand %p2035_p11, %p2568_p10  ;;  %s222_s8 = int_to_ptr.vmem [resolvable:$true] %s221_s8 }
  0x45   : > { %s209_s9 = scalar_lea.sflag [#allocation6], %s208_s13  ;;  %s2321_s21 = scalar_lea.vmem %s222_s8, 1024 }
  0x46   : > { %p2310_p7 = pneg %p2591_p2  ;;  %p2322_p9 = scmp.ne.s32.totalorder %s222_s8, %s2321_s21 }
  0x47   : > { %s2433_s11 = smov [#allocation5]  }
  0x48   : > { %p2324_p12 = pnand %p2322_p9, %p2310_p7  ;;  %s2326_s1 = sshll.u32 %s2433_s11, 4  ;;  %s2327_s1 = int_to_ptr.vmem [resolvable:$false] %s2326_s1 }
  0x49   : > { %s2328_s28 = scalar_lea.vmem %s2327_s1, 2048  ;;  %p2329_p0 = scmp.lt.s32.totalorder %s222_s8, %s2327_s1 }
  0x4a   : > { %p2325_p13 = pneg %p2324_p12  ;;  %p2330_p3 = scmp.lt.s32.totalorder %s2328_s28, %s2321_s21 }
  0x4c   : > { %p2331_p6 = por %p2330_p3, %p2329_p0 }
  0x4e   : > { %p2332_p5 = pnand %p2331_p6, %p2325_p13 }
  0x50   : > { %2335 = shalt.err (!%p2332_p5)
}
  0x51   : > { %s3349_s30 = smov 16   ;;  %s3350_s14 = smov 256  }
  0x52   : > { %2027 = dma.hbm_to_vmem [thread:$0]  (!%p2591_p2), %s220_s7, 1024, %s222_s8, %s209_s9, %s3350_s14, %s3350_s14, %s3349_s30  }
  0x53   : > { %233 = sbr.rel (%p2519_p8) target bundleno = 1331 (0x533), region = 36 }
  0x58   : > { %s2605_s13 = sand.u32 1, %s2408_s16  }
  0x59   : > { %s1896_s1 = sshll.u32 %s2605_s13, 6  ;;  %s236_s29 = scalar_lea.sflag [#allocation6], %s2605_s13 }
  0x5a   : > { %s239_s5 = scalar_lea.vmem [#allocation5], %s1896_s1 }
  0x5b   : > { %2387 = dma.done.wait (%p2509_p4), %s236_s29, 1024  }
  0x5c   : > { %2389 = vsyncadd (%p2509_p4), %s236_s29, 4294966272 }
  0x5d   : > { %2391 = dma.done.wait (%p2499_p1), [#allocation9], 1536  }
  0x5e   : > { %2393 = vsyncadd (%p2499_p1), [#allocation9], 4294965760 }
  0x5f   : > { %2395 = dma.done.wait (%p2499_p1), [#allocation12], 2048  }
  0x60   : > { %2397 = vsyncadd (%p2499_p1), [#allocation12], 4294965248  ;;  %v2434_v0 = vmov 0.0   ;;  %v338_v1 = vld [vmem:[#allocation8] sm:$0xff]  ;;  %v337_v2 = vld [vmem:[%s239_s5 + $0x38] sm:$0xff]  ;;  %vm410_vm0 = vcmask 261120  }
  0x61   : > { %571 = vmatprep.mubr.f32.mxu0 %v2434_v0  ;;  %346 = vxpose.xlu0.b32.start [1/4] (short) %v338_v1, 128  ;;  %v336_v3 = vld [vmem:[%s239_s5 + $0x30] sm:$0xff]  ;;  %v335_v5 = vld [vmem:[%s239_s5 + $0x28] sm:$0xff]  ;;  %v334_v6 = vld [vmem:[%s239_s5 + $0x20] sm:$0xff]  ;;  %vm297_vm1 = vcmask 7168   ;;  %v2435_v49 = vmov -inf   ;;  %v2436_v63 = vmov 0  }
  0x62   : > { %v340_v4 = vld [vmem:[#allocation8 + $0x10] sm:$0xff]  ;;  %531 = vmatprep.subr.mxu0 %v337_v2  ;;  %v333_v7 = vld [vmem:[%s239_s5 + $0x18] sm:$0xff]  ;;  %v339_v9 = vld [vmem:[#allocation8 + $0x8] sm:$0xff]  ;;  %314 = vst.msk [vmem:[#allocation3] sm:$0xff] %vm297_vm1, %v2435_v49  ;;  %s1900_s23 = sshll.u32 %s2605_s13, 5  ;;  %s1939_s8 = sshll.u32 %s2416_s18, 9 }
  0x63   : > { %532 = vmatpush1.msra.mxu0 %v336_v3  ;;  %v332_v8 = vld [vmem:[%s239_s5 + $0x10] sm:$0xff]  ;;  %v331_v10 = vld [vmem:[%s239_s5 + $0x8] sm:$0xff]  ;;  %v342_v11 = vld [vmem:[#allocation8 + $0x20] sm:$0xff]  ;;  %378 = vxpose.xlu1.b32.start [1/4] (short) %v339_v9, 128  ;;  %298 = vst.msk [vmem:[#allocation4] sm:$0xff] %vm297_vm1, %v2434_v0  ;;  %s275_s25 = scalar_lea.vmem [#allocation13], %s1900_s23  ;;  %s3269_s10 = scalar_lea.hbm %s3321_s4, %s1939_s8 }
  0x64   : > { %533 = vmatprep.subr.mxu0 %v335_v5  ;;  %v330_v12 = vld [vmem:[%s239_s5] sm:$0xff]  ;;  %v341_v13 = vld [vmem:[#allocation8 + $0x18] sm:$0xff]  ;;  %v344_v14 = vld [vmem:[#allocation8 + $0x30] sm:$0xff]  ;;  %299 = vst.msk [vmem:[#allocation4 + $0x8] sm:$0xff] %vm297_vm1, %v2434_v0  ;;  %s1772_s27 = sshll.u32 %s275_s25, 4  ;;  %s1759_s24 = scalar_lea.sflag [#allocation7], %s2605_s13  ;;  %s3264_s27 = int_to_ptr.vmem [resolvable:$true] %s1772_s27 }
  0x65   : > { %347 = vxpose.xlu0.b32.cont [2/4] (short) %v340_v4, 128  ;;  %534 = vmatpush1.msra.mxu0 %v334_v6  ;;  %v343_v15 = vld [vmem:[#allocation8 + $0x28] sm:$0xff]  ;;  %v345_v16 = vld [vmem:[#allocation8 + $0x38] sm:$0xff]  ;;  %300 = vst.msk [vmem:[#allocation4 + $0x10] sm:$0xff] %vm297_vm1, %v2434_v0  ;;  %301 = vst.msk [vmem:[#allocation4 + $0x18] sm:$0xff] %vm297_vm1, %v2434_v0  ;;  %s2336_s21 = scalar_lea.vmem %s3264_s27, 512  ;;  %p3393_p4 = scmp.ne.s32.totalorder %s3347_s12, 0 }
  0x66   : > { %535 = vmatprep.subr.mxu0 %v333_v7  ;;  %302 = vst.msk [vmem:[#allocation4 + $0x20] sm:$0xff] %vm297_vm1, %v2434_v0  ;;  %303 = vst.msk [vmem:[#allocation4 + $0x28] sm:$0xff] %vm297_vm1, %v2434_v0  ;;  %p2337_p1 = scmp.ne.s32.totalorder %s3264_s27, %s2336_s21  ;;  %s2437_s18 = smov [#allocation13]  }
  0x67   : > { %536 = vmatpush1.msra.mxu0 %v332_v8  ;;  %379 = vxpose.xlu1.b32.cont [2/4] (short) %v341_v13, 128  ;;  %304 = vst.msk [vmem:[#allocation4 + $0x30] sm:$0xff] %vm297_vm1, %v2434_v0  ;;  %305 = vst.msk [vmem:[#allocation4 + $0x38] sm:$0xff] %vm297_vm1, %v2434_v0  ;;  %s2340_s11 = sshll.u32 %s2437_s18, 4  ;;  %s2341_s11 = int_to_ptr.vmem [resolvable:$false] %s2340_s11 }
  0x68   : > { %537 = vmatprep.subr.mxu0 %v331_v10  ;;  %306 = vst.msk [vmem:[#allocation4 + $0x40] sm:$0xff] %vm297_vm1, %v2434_v0  ;;  %307 = vst.msk [vmem:[#allocation4 + $0x48] sm:$0xff] %vm297_vm1, %v2434_v0  ;;  %p2338_p6 = pnand %p2337_p1, %p3393_p4  ;;  %s2342_s28 = scalar_lea.vmem %s2341_s11, 1024 }
  0x69   : > { %348 = vxpose.xlu0.b32.cont [3/4] (short) %v342_v11, 128  ;;  %538 = vmatpush1.msra.mxu0 %v330_v12  ;;  %308 = vst.msk [vmem:[#allocation4 + $0x50] sm:$0xff] %vm297_vm1, %v2434_v0  ;;  %309 = vst.msk [vmem:[#allocation4 + $0x58] sm:$0xff] %vm297_vm1, %v2434_v0  ;;  %p2343_p10 = scmp.lt.s32.totalorder %s3264_s27, %s2341_s11  ;;  %p2344_p5 = scmp.lt.s32.totalorder %s2342_s28, %s2336_s21 }
  0x6a   : > { %310 = vst.msk [vmem:[#allocation4 + $0x60] sm:$0xff] %vm297_vm1, %v2434_v0  ;;  %311 = vst.msk [vmem:[#allocation4 + $0x68] sm:$0xff] %vm297_vm1, %v2434_v0  ;;  %p2339_p8 = pneg %p2338_p6 }
  0x6b   : > { %380 = vxpose.xlu1.b32.cont [3/4] (short) %v343_v15, 128  ;;  %312 = vst.msk [vmem:[#allocation4 + $0x70] sm:$0xff] %vm297_vm1, %v2434_v0  ;;  %313 = vst.msk [vmem:[#allocation4 + $0x78] sm:$0xff] %vm297_vm1, %v2434_v0  ;;  %p2345_p11 = por %p2344_p5, %p2343_p10 }
  0x6c   : > { %315 = vst.msk [vmem:[#allocation3 + $0x8] sm:$0xff] %vm297_vm1, %v2435_v49  ;;  %316 = vst.msk [vmem:[#allocation3 + $0x10] sm:$0xff] %vm297_vm1, %v2435_v49 }
  0x6d   : > { %349 = vxpose.xlu0.b32.end [4/4] (short) %v344_v14, 128  ;;  %317 = vst.msk [vmem:[#allocation3 + $0x18] sm:$0xff] %vm297_vm1, %v2435_v49  ;;  %318 = vst.msk [vmem:[#allocation3 + $0x20] sm:$0xff] %vm297_vm1, %v2435_v49  ;;  %p2346_p2 = pnand %p2345_p11, %p2339_p8 }
  0x6e   : > { %319 = vst.msk [vmem:[#allocation3 + $0x28] sm:$0xff] %vm297_vm1, %v2435_v49  ;;  %320 = vst.msk [vmem:[#allocation3 + $0x30] sm:$0xff] %vm297_vm1, %v2435_v49 }
  0x6f   : > { %381 = vxpose.xlu1.b32.end [4/4] (short) %v345_v16, 128  ;;  %321 = vst.msk [vmem:[#allocation3 + $0x38] sm:$0xff] %vm297_vm1, %v2435_v49  ;;  %322 = vst.msk [vmem:[#allocation3 + $0x40] sm:$0xff] %vm297_vm1, %v2435_v49 }
  0x70   : > { %323 = vst.msk [vmem:[#allocation3 + $0x48] sm:$0xff] %vm297_vm1, %v2435_v49  ;;  %324 = vst.msk [vmem:[#allocation3 + $0x50] sm:$0xff] %vm297_vm1, %v2435_v49 }
  0x71   : > { %325 = vst.msk [vmem:[#allocation3 + $0x58] sm:$0xff] %vm297_vm1, %v2435_v49  ;;  %326 = vst.msk [vmem:[#allocation3 + $0x60] sm:$0xff] %vm297_vm1, %v2435_v49 }
  0x72   : > { %327 = vst.msk [vmem:[#allocation3 + $0x68] sm:$0xff] %vm297_vm1, %v2435_v49  ;;  %328 = vst.msk [vmem:[#allocation3 + $0x70] sm:$0xff] %vm297_vm1, %v2435_v49 }
  0x73   : > { %329 = vst.msk [vmem:[#allocation3 + $0x78] sm:$0xff] %vm297_vm1, %v2435_v49 }
  0x8d   : > { %2101 = vset.pattern.permute.xlu1 %v2436_v63 }
  0x96   : > { %2100 = vset.pattern.permute.xlu0 %v2436_v63 }
  0xdd   : > { %v362_v17 = vpop.trf.xlu0 }
  0xde   : > { %1901 = vmatmul.mubr.msk.f32.vlgmr.msra.gmra.mxu0 %vm410_vm0, %v362_v17 }
  0xdf   : > { %577 = vmatprep.mubr.f32.mxu0 %v2434_v0  ;;  %v394_v26 = vpop.trf.xlu1 }
  0xe1   : > { %v363_v18 = vpop.trf.xlu0 }
  0xe2   : > { %1902 = vmatmul.mubr.msk.f32.gmra.mxu0 %vm410_vm0, %v363_v18 }
  0xe3   : > { %583 = vmatprep.mubr.f32.mxu0 %v2434_v0  ;;  %v395_v28 = vpop.trf.xlu1 }
  0xe5   : > { %v364_v19 = vpop.trf.xlu0 }
  0xe6   : > { %1903 = vmatmul.mubr.msk.f32.gmra.mxu0 %vm410_vm0, %v364_v19 }
  0xe7   : > { %589 = vmatprep.mubr.f32.mxu0 %v2434_v0  ;;  %v396_v31 = vpop.trf.xlu1 }
  0xe9   : > { %v365_v20 = vpop.trf.xlu0 }
  0xea   : > { %1904 = vmatmul.mubr.msk.f32.gmra.mxu0 %vm410_vm0, %v365_v20 }
  0xeb   : > { %595 = vmatprep.mubr.f32.mxu0 %v2434_v0  ;;  %v397_v33 = vpop.trf.xlu1 }
  0xed   : > { %v366_v21 = vpop.trf.xlu0 }
  0xee   : > { %1905 = vmatmul.mubr.msk.f32.gmra.mxu0 %vm410_vm0, %v366_v21 }
  0xef   : > { %601 = vmatprep.mubr.f32.mxu0 %v2434_v0  ;;  %v398_v36 = vpop.trf.xlu1 }
  0xf1   : > { %v367_v22 = vpop.trf.xlu0 }
  0xf2   : > { %1906 = vmatmul.mubr.msk.f32.gmra.mxu0 %vm410_vm0, %v367_v22 }
  0xf3   : > { %607 = vmatprep.mubr.f32.mxu0 %v2434_v0  ;;  %v399_v38 = vpop.trf.xlu1 }
  0xf5   : > { %v368_v23 = vpop.trf.xlu0 }
  0xf6   : > { %1907 = vmatmul.mubr.msk.f32.gmra.mxu0 %vm410_vm0, %v368_v23 }
  0xf7   : > { %613 = vmatprep.mubr.f32.mxu0 %v2434_v0  ;;  %v400_v39 = vpop.trf.xlu1 }
  0xf9   : > { %v369_v24 = vpop.trf.xlu0 }
  0xfa   : > { %1908 = vmatmul.mubr.msk.f32.gmra.mxu0 %vm410_vm0, %v369_v24 }
  0xfb   : > { %619 = vmatprep.mubr.f32.mxu0 %v2434_v0  ;;  %v401_v40 = vpop.trf.xlu1 }
  0xfd   : > { %v370_v25 = vpop.trf.xlu0 }
  0xfe   : > { %1909 = vmatmul.mubr.msk.f32.gmra.mxu0 %vm410_vm0, %v370_v25 }
  0xff   : > { %625 = vmatprep.mubr.f32.mxu0 %v2434_v0  ;;  %v402_v41 = vpop.trf.xlu1 }
 0x101   : > { %v371_v27 = vpop.trf.xlu0 }
 0x102   : > { %1910 = vmatmul.mubr.msk.f32.gmra.mxu0 %vm410_vm0, %v371_v27 }
 0x103   : > { %631 = vmatprep.mubr.f32.mxu0 %v2434_v0  ;;  %v403_v42 = vpop.trf.xlu1 }
 0x105   : > { %v372_v29 = vpop.trf.xlu0 }
 0x106   : > { %1911 = vmatmul.mubr.msk.f32.gmra.mxu0 %vm410_vm0, %v372_v29 }
 0x107   : > { %637 = vmatprep.mubr.f32.mxu0 %v2434_v0  ;;  %v404_v43 = vpop.trf.xlu1 }
 0x109   : > { %v373_v30 = vpop.trf.xlu0 }
 0x10a   : > { %1912 = vmatmul.mubr.msk.f32.gmra.mxu0 %vm410_vm0, %v373_v30 }
 0x10b   : > { %643 = vmatprep.mubr.f32.mxu0 %v2434_v0  ;;  %v405_v44 = vpop.trf.xlu1 }
 0x10d   : > { %v374_v32 = vpop.trf.xlu0 }
 0x10e   : > { %1913 = vmatmul.mubr.msk.f32.gmra.mxu0 %vm410_vm0, %v374_v32 }
 0x10f   : > { %649 = vmatprep.mubr.f32.mxu0 %v2434_v0  ;;  %v406_v45 = vpop.trf.xlu1 }
 0x111   : > { %v375_v34 = vpop.trf.xlu0 }
 0x112   : > { %1914 = vmatmul.mubr.msk.f32.gmra.mxu0 %vm410_vm0, %v375_v34 }
 0x113   : > { %655 = vmatprep.mubr.f32.mxu0 %v2434_v0  ;;  %v407_v46 = vpop.trf.xlu1 }
 0x115   : > { %v376_v35 = vpop.trf.xlu0 }
 0x116   : > { %1915 = vmatmul.mubr.msk.f32.gmra.mxu0 %vm410_vm0, %v376_v35 }
 0x117   : > { %661 = vmatprep.mubr.f32.mxu0 %v2434_v0  ;;  %v408_v47 = vpop.trf.xlu1 }
 0x119   : > { %v377_v37 = vpop.trf.xlu0 }
 0x11a   : > { %1916 = vmatmul.mubr.msk.f32.gmra.mxu0 %vm410_vm0, %v377_v37 }
 0x11b   : > { %667 = vmatprep.mubr.f32.mxu0 %v2434_v0  ;;  %v409_v48 = vpop.trf.xlu1 }
 0x11e   : > { %1917 = vmatmul.mubr.msk.f32.gmra.mxu0 %vm410_vm0, %v394_v26 }
 0x11f   : > { %673 = vmatprep.mubr.f32.mxu0 %v2434_v0 }
 0x122   : > { %1918 = vmatmul.mubr.msk.f32.gmra.mxu0 %vm410_vm0, %v395_v28 }
 0x123   : > { %679 = vmatprep.mubr.f32.mxu0 %v2434_v0 }
 0x126   : > { %1919 = vmatmul.mubr.msk.f32.gmra.mxu0 %vm410_vm0, %v396_v31 }
 0x127   : > { %685 = vmatprep.mubr.f32.mxu0 %v2434_v0 }
 0x12a   : > { %1920 = vmatmul.mubr.msk.f32.gmra.mxu0 %vm410_vm0, %v397_v33 }
 0x12b   : > { %691 = vmatprep.mubr.f32.mxu0 %v2434_v0 }
 0x12e   : > { %1921 = vmatmul.mubr.msk.f32.gmra.mxu0 %vm410_vm0, %v398_v36 }
 0x12f   : > { %697 = vmatprep.mubr.f32.mxu0 %v2434_v0 }
 0x132   : > { %1922 = vmatmul.mubr.msk.f32.gmra.mxu0 %vm410_vm0, %v399_v38 }
 0x133   : > { %703 = vmatprep.mubr.f32.mxu0 %v2434_v0 }
 0x136   : > { %1923 = vmatmul.mubr.msk.f32.gmra.mxu0 %vm410_vm0, %v400_v39 }
 0x137   : > { %709 = vmatprep.mubr.f32.mxu0 %v2434_v0 }
 0x13a   : > { %1924 = vmatmul.mubr.msk.f32.gmra.mxu0 %vm410_vm0, %v401_v40 }
 0x13b   : > { %715 = vmatprep.mubr.f32.mxu0 %v2434_v0 }
 0x13e   : > { %1925 = vmatmul.mubr.msk.f32.gmra.mxu0 %vm410_vm0, %v402_v41 }
 0x13f   : > { %721 = vmatprep.mubr.f32.mxu0 %v2434_v0 }
 0x142   : > { %1926 = vmatmul.mubr.msk.f32.gmra.mxu0 %vm410_vm0, %v403_v42 }
 0x143   : > { %727 = vmatprep.mubr.f32.mxu0 %v2434_v0 }
 0x146   : > { %1927 = vmatmul.mubr.msk.f32.gmra.mxu0 %vm410_vm0, %v404_v43 }
 0x147   : > { %733 = vmatprep.mubr.f32.mxu0 %v2434_v0 }
 0x14a   : > { %1928 = vmatmul.mubr.msk.f32.gmra.mxu0 %vm410_vm0, %v405_v44 }
 0x14b   : > { %739 = vmatprep.mubr.f32.mxu0 %v2434_v0 }
 0x14e   : > { %1929 = vmatmul.mubr.msk.f32.gmra.mxu0 %vm410_vm0, %v406_v45 }
 0x14f   : > { %745 = vmatprep.mubr.f32.mxu0 %v2434_v0 }
 0x152   : > { %1930 = vmatmul.mubr.msk.f32.gmra.mxu0 %vm410_vm0, %v407_v46 }
 0x153   : > { %751 = vmatprep.mubr.f32.mxu0 %v2434_v0 }
 0x156   : > { %1931 = vmatmul.mubr.msk.f32.gmra.mxu0 %vm410_vm0, %v408_v47 }
 0x157   : > { %757 = vmatprep.mubr.f32.mxu0 %v2434_v0 }
 0x15a   : > { %1932 = vmatmul.mubr.msk.f32.gmra.mxu0 %vm410_vm0, %v409_v48 }
 0x19e   : > { %v2733_v50 = vpop.f32.mrf.mxu0 }
 0x1a0   : > { %v2735_v51 = vpop.f32.mrf.mxu0 }
 0x1a1   : > { %v780_v52 = vmax.f32 %v2733_v50, %v2735_v51 }
 0x1a2   : > { %v2739_v53 = vpop.f32.mrf.mxu0 }
 0x1a3   : > { %781 = vmax.xlane.f32.xlu0 %v780_v52 }
 0x1a4   : > { %v2741_v54 = vpop.f32.mrf.mxu0 }
 0x1a5   : > { %v783_v55 = vmax.f32 %v2739_v53, %v2741_v54 }
 0x1a6   : > { %v2745_v56 = vpop.f32.mrf.mxu0 }
 0x1a7   : > { %784 = vmax.xlane.f32.xlu1 %v783_v55 }
 0x1a8   : > { %v2747_v57 = vpop.f32.mrf.mxu0 }
 0x1a9   : > { %v786_v58 = vmax.f32 %v2745_v56, %v2747_v57 }
 0x1aa   : > { %v2751_v59 = vpop.f32.mrf.mxu0 }
 0x1ab   : > { %787 = vmax.xlane.f32.xlu1 %v786_v58 }
 0x1ac   : > { %v2753_v60 = vpop.f32.mrf.mxu0 }
 0x1ad   : > { %v789_v61 = vmax.f32 %v2751_v59, %v2753_v60 }
 0x1ae   : > { %v2757_v62 = vpop.f32.mrf.mxu0 }
 0x1af   : > { %790 = vmax.xlane.f32.xlu1 %v789_v61 }
 0x1b0   : > { %v2759_v0 = vpop.f32.mrf.mxu0 }
 0x1b1   : > { %v792_v1 = vmax.f32 %v2757_v62, %v2759_v0 }
 0x1b2   : > { %v2763_v2 = vpop.f32.mrf.mxu0 }
 0x1b3   : > { %793 = vmax.xlane.f32.xlu0 %v792_v1 }
 0x1b4   : > { %v2765_v3 = vpop.f32.mrf.mxu0 }
 0x1b5   : > { %v795_v4 = vmax.f32 %v2763_v2, %v2765_v3 }
 0x1b6   : > { %v2769_v5 = vpop.f32.mrf.mxu0 }
 0x1b7   : > { %796 = vmax.xlane.f32.xlu1 %v795_v4 }
 0x1b8   : > { %v2771_v6 = vpop.f32.mrf.mxu0 }
 0x1b9   : > { %v798_v7 = vmax.f32 %v2769_v5, %v2771_v6 }
 0x1ba   : > { %v2775_v8 = vpop.f32.mrf.mxu0 }
 0x1bb   : > { %799 = vmax.xlane.f32.xlu0 %v798_v7 }
 0x1bc   : > { %v2777_v9 = vpop.f32.mrf.mxu0 }
 0x1bd   : > { %v801_v10 = vmax.f32 %v2775_v8, %v2777_v9 }
 0x1be   : > { %v2781_v11 = vpop.f32.mrf.mxu0 }
 0x1bf   : > { %802 = vmax.xlane.f32.xlu1 %v801_v10 }
 0x1c0   : > { %v2783_v12 = vpop.f32.mrf.mxu0 }
 0x1c1   : > { %v804_v13 = vmax.f32 %v2781_v11, %v2783_v12 }
 0x1c2   : > { %v2787_v14 = vpop.f32.mrf.mxu0 }
 0x1c3   : > { %805 = vmax.xlane.f32.xlu0 %v804_v13 }
 0x1c4   : > { %v2789_v15 = vpop.f32.mrf.mxu0 }
 0x1c5   : > { %v807_v16 = vmax.f32 %v2787_v14, %v2789_v15 }
 0x1c6   : > { %v2793_v17 = vpop.f32.mrf.mxu0 }
 0x1c7   : > { %808 = vmax.xlane.f32.xlu1 %v807_v16 }
 0x1c8   : > { %v2795_v18 = vpop.f32.mrf.mxu0 }
 0x1c9   : > { %v810_v19 = vmax.f32 %v2793_v17, %v2795_v18 }
 0x1ca   : > { %v2799_v20 = vpop.f32.mrf.mxu0 }
 0x1cb   : > { %811 = vmax.xlane.f32.xlu0 %v810_v19 }
 0x1cc   : > { %v2801_v21 = vpop.f32.mrf.mxu0 }
 0x1cd   : > { %v813_v22 = vmax.f32 %v2799_v20, %v2801_v21 }
 0x1ce   : > { %v2805_v23 = vpop.f32.mrf.mxu0 }
 0x1cf   : > { %814 = vmax.xlane.f32.xlu1 %v813_v22 }
 0x1d0   : > { %v2807_v24 = vpop.f32.mrf.mxu0 }
 0x1d1   : > { %v816_v25 = vmax.f32 %v2805_v23, %v2807_v24 }
 0x1d2   : > { %v2811_v26 = vpop.f32.mrf.mxu0 }
 0x1d3   : > { %817 = vmax.xlane.f32.xlu0 %v816_v25 }
 0x1d4   : > { %v2813_v27 = vpop.f32.mrf.mxu0 }
 0x1d5   : > { %v819_v28 = vmax.f32 %v2811_v26, %v2813_v27 }
 0x1d6   : > { %v2817_v29 = vpop.f32.mrf.mxu0 }
 0x1d7   : > { %3351 = vst [vmem:[#allocation18_spill] sm:$0xff] %v2817_v29  ;;  %820 = vmax.xlane.f32.xlu1 %v819_v28 }
 0x1d8   : > { %v2819_v30 = vpop.f32.mrf.mxu0 }
 0x1d9   : > { %3352 = vst [vmem:[#allocation19_spill] sm:$0xff] %v2819_v30  ;;  %v822_v31 = vmax.f32 %v2817_v29, %v2819_v30  ;;  %v2862_v29 = vld [vmem:[#allocation3 + $0x8] sm:$0xff] }
 0x1da   : > { %v2823_v32 = vpop.f32.mrf.mxu0  ;;  %3357 = vst [vmem:[#allocation24_spill] sm:$0xff] %v2862_v29 }
 0x1db   : > { %3353 = vst [vmem:[#allocation20_spill] sm:$0xff] %v2823_v32  ;;  %823 = vmax.xlane.f32.xlu0 %v822_v31 }
 0x1dc   : > { %v2825_v33 = vpop.f32.mrf.mxu0 }
 0x1dd   : > { %3354 = vst [vmem:[#allocation21_spill] sm:$0xff] %v2825_v33  ;;  %v825_v34 = vmax.f32 %v2823_v32, %v2825_v33  ;;  %v2857_v33 = vld [vmem:[#allocation3] sm:$0xff] }
 0x1de   : > { %v2829_v35 = vpop.f32.mrf.mxu0  ;;  %3355 = vst [vmem:[#allocation22_spill] sm:$0xff] %v2857_v33 }
 0x1df   : > { %826 = vmax.xlane.f32.xlu1 %v825_v34 }
 0x1e0   : > { %v2831_v36 = vpop.f32.mrf.mxu0 }
 0x1e2   : > { %v2833_v37 = vpop.f32.mrf.mxu0 }
 0x1e4   : > { %v2835_v38 = vpop.f32.mrf.mxu0 }
 0x1e6   : > { %v2837_v39 = vpop.f32.mrf.mxu0 }
 0x1e8   : > { %v2839_v40 = vpop.f32.mrf.mxu0 }
 0x1ea   : > { %v2841_v41 = vpop.f32.mrf.mxu0 }
 0x1ec   : > { %v2843_v42 = vpop.f32.mrf.mxu0 }
 0x1ee   : > { %v2845_v43 = vpop.f32.mrf.mxu0 }
 0x1f0   : > { %v2847_v44 = vpop.f32.mrf.mxu0 }
 0x1f2   : > { %v2849_v45 = vpop.f32.mrf.mxu0 }
 0x1f4   : > { %v2851_v46 = vpop.f32.mrf.mxu0 }
 0x1f6   : > { %v2853_v47 = vpop.f32.mrf.mxu0 }
 0x1f8   : > { %v2855_v48 = vpop.f32.mrf.mxu0 }
 0x1fa   : > { %v711_v49 = vpop.f32.mrf.mxu0 }
 0x1fc   : > { %v713_v52 = vpop.f32.mrf.mxu0 }
 0x1fe   : > { %v717_v55 = vpop.f32.mrf.mxu0 }
 0x200   : > { %v719_v58 = vpop.f32.mrf.mxu0 }
 0x202   : > { %v723_v61 = vpop.f32.mrf.mxu0 }
 0x204   : > { %v725_v63 = vpop.f32.mrf.mxu0 }
 0x206   : > { %v729_v1 = vpop.f32.mrf.mxu0 }
 0x208   : > { %v731_v4 = vpop.f32.mrf.mxu0 }
 0x20a   : > { %v735_v7 = vpop.f32.mrf.mxu0 }
 0x20c   : > { %v737_v10 = vpop.f32.mrf.mxu0 }
 0x20e   : > { %v741_v13 = vpop.f32.mrf.mxu0 }
 0x210   : > { %v743_v16 = vpop.f32.mrf.mxu0 }
 0x212   : > { %v747_v19 = vpop.f32.mrf.mxu0 }
 0x214   : > { %v749_v22 = vpop.f32.mrf.mxu0 }
 0x216   : > { %v753_v25 = vpop.f32.mrf.mxu0 }
 0x218   : > { %v755_v28 = vpop.f32.mrf.mxu0 }
 0x21a   : > { %v759_v31 = vpop.f32.mrf.mxu0 }
 0x21c   : > { %v761_v34 = vpop.f32.mrf.mxu0 }
 0x21d   : > { %1293 = vmatprep.subr.mxu1 %v761_v34 }
 0x21e   : > { %1294 = vmatpush1.xpose.msra.mxu1 %v759_v31 }
 0x21f   : > { %1295 = vmatprep.subr.mxu1 %v755_v28 }
 0x222   : > { %1296 = vmatpush1.xpose.msra.mxu1 %v753_v25 }
 0x223   : > { %1297 = vmatprep.subr.mxu1 %v749_v22 }
 0x226   : > { %1298 = vmatpush1.xpose.msra.mxu1 %v747_v19 }
 0x227   : > { %1299 = vmatprep.subr.mxu1 %v743_v16 }
 0x22a   : > { %1300 = vmatpush1.xpose.msra.mxu1 %v741_v13 }
 0x22b   : > { %1301 = vmatprep.subr.mxu1 %v737_v10  ;;  %v2872_v10 = vld [vmem:[#allocation3 + $0x10] sm:$0xff] }
 0x22c   : > { %v782_v32 = vpop.xlane.xlu0 %781  ;;  %3359 = vst [vmem:[#allocation26_spill] sm:$0xff] %v2872_v10 }
 0x22d   : > { %v2860_v30 = vmax.f32 %v2857_v33, %v782_v32 }
 0x22e   : > { %1302 = vmatpush1.xpose.msra.mxu1 %v735_v7 }
 0x22f   : > { %3356 = vst [vmem:[#allocation23_spill] sm:$0xff] %v2860_v30  ;;  %1470 = vst.msk [vmem:[#allocation3] sm:$0xff] %vm297_vm1, %v2860_v30  ;;  %894 = vperm.xlu0 %2100, %v2860_v30   ;;  %1303 = vmatprep.subr.mxu1 %v731_v4  ;;  %v2882_v4 = vld [vmem:[#allocation3 + $0x18] sm:$0xff] }
 0x230   : > { %v785_v16 = vpop.xlane.xlu1 %784  ;;  %3361 = vst [vmem:[#allocation28_spill] sm:$0xff] %v2882_v4 }
 0x231   : > { %v2870_v13 = vmax.f32 %v2862_v29, %v785_v16 }
 0x232   : > { %1304 = vmatpush1.xpose.msra.mxu1 %v729_v1 }
 0x233   : > { %3358 = vst [vmem:[#allocation25_spill] sm:$0xff] %v2870_v13  ;;  %1471 = vst.msk [vmem:[#allocation3 + $0x8] sm:$0xff] %vm297_vm1, %v2870_v13  ;;  %899 = vperm.xlu1 %2101, %v2870_v13   ;;  %1305 = vmatprep.subr.mxu1 %v725_v63  ;;  %v2892_v63 = vld [vmem:[#allocation3 + $0x20] sm:$0xff] }
 0x234   : > { %v788_v7 = vpop.xlane.xlu1 %787 }
 0x235   : > { %v2880_v19 = vmax.f32 %v2872_v10, %v788_v7  ;;  %v2913_v7 = vld [vmem:[#allocation3 + $0x30] sm:$0xff] }
 0x236   : > { %1306 = vmatpush1.xpose.msra.mxu1 %v723_v61 }
 0x237   : > { %3360 = vst [vmem:[#allocation27_spill] sm:$0xff] %v2880_v19  ;;  %1472 = vst.msk [vmem:[#allocation3 + $0x10] sm:$0xff] %vm297_vm1, %v2880_v19  ;;  %904 = vperm.xlu1 %2101, %v2880_v19   ;;  %1307 = vmatprep.subr.mxu1 %v719_v58  ;;  %v2902_v58 = vld [vmem:[#allocation3 + $0x28] sm:$0xff] }
 0x238   : > { %v791_v1 = vpop.xlane.xlu1 %790 }
 0x239   : > { %v2890_v25 = vmax.f32 %v2882_v4, %v791_v1 }
 0x23a   : > { %1308 = vmatpush1.xpose.msra.mxu1 %v717_v55 }
 0x23b   : > { %3362 = vst [vmem:[#allocation29_spill] sm:$0xff] %v2890_v25  ;;  %1473 = vst.msk [vmem:[#allocation3 + $0x18] sm:$0xff] %vm297_vm1, %v2890_v25  ;;  %909 = vperm.xlu1 %2101, %v2890_v25   ;;  %1309 = vmatprep.subr.mxu1 %v713_v52 }
 0x23c   : > { %v794_v61 = vpop.xlane.xlu0 %793 }
 0x23d   : > { %v2900_v31 = vmax.f32 %v2892_v63, %v794_v61  ;;  %v2925_v61 = vld [vmem:[#allocation3 + $0x38] sm:$0xff] }
 0x23e   : > { %1310 = vmatpush1.xpose.msra.mxu1 %v711_v49 }
 0x23f   : > { %3363 = vst [vmem:[#allocation30_spill] sm:$0xff] %v2900_v31  ;;  %1474 = vst.msk [vmem:[#allocation3 + $0x20] sm:$0xff] %vm297_vm1, %v2900_v31  ;;  %914 = vperm.xlu1 %2101, %v2900_v31   ;;  %1311 = vmatprep.subr.mxu1 %v2855_v48 }
 0x240   : > { %v797_v55 = vpop.xlane.xlu1 %796 }
 0x241   : > { %v2911_v52 = vmax.f32 %v2902_v58, %v797_v55 }
 0x242   : > { %1312 = vmatpush1.xpose.msra.mxu1 %v2853_v47 }
 0x243   : > { %1475 = vst.msk [vmem:[#allocation3 + $0x28] sm:$0xff] %vm297_vm1, %v2911_v52  ;;  %919 = vperm.xlu1 %2101, %v2911_v52   ;;  %1313 = vmatprep.subr.mxu1 %v2851_v46 }
 0x244   : > { %v800_v1 = vpop.xlane.xlu0 %799 }
 0x245   : > { %v2923_v48 = vmax.f32 %v2913_v7, %v800_v1  ;;  %v2937_v1 = vld [vmem:[#allocation3 + $0x40] sm:$0xff] }
 0x246   : > { %1314 = vmatpush1.xpose.msra.mxu1 %v2849_v45  ;;  %v3006_v45 = vld [vmem:[#allocation3 + $0x70] sm:$0xff] }
 0x247   : > { %1476 = vst.msk [vmem:[#allocation3 + $0x30] sm:$0xff] %vm297_vm1, %v2923_v48  ;;  %924 = vperm.xlu1 %2101, %v2923_v48   ;;  %1315 = vmatprep.subr.mxu1 %v2847_v44 }
 0x248   : > { %v803_v55 = vpop.xlane.xlu1 %802 }
 0x249   : > { %v2935_v46 = vmax.f32 %v2925_v61, %v803_v55  ;;  %v2949_v55 = vld [vmem:[#allocation3 + $0x48] sm:$0xff] }
 0x24a   : > { %1316 = vmatpush1.xpose.msra.mxu1 %v2845_v43 }
 0x24b   : > { %1477 = vst.msk [vmem:[#allocation3 + $0x38] sm:$0xff] %vm297_vm1, %v2935_v46  ;;  %929 = vperm.xlu1 %2101, %v2935_v46   ;;  %1317 = vmatprep.subr.mxu1 %v2843_v42 }
 0x24c   : > { %v806_v34 = vpop.xlane.xlu0 %805 }
 0x24d   : > { %v2947_v44 = vmax.f32 %v2937_v1, %v806_v34  ;;  %v2961_v34 = vld [vmem:[#allocation3 + $0x50] sm:$0xff] }
 0x24e   : > { %1318 = vmatpush1.xpose.msra.mxu1 %v2841_v41 }
 0x24f   : > { %1478 = vst.msk [vmem:[#allocation3 + $0x40] sm:$0xff] %vm297_vm1, %v2947_v44  ;;  %934 = vperm.xlu1 %2101, %v2947_v44   ;;  %1319 = vmatprep.subr.mxu1 %v2839_v40 }
 0x250   : > { %v809_v32 = vpop.xlane.xlu1 %808 }
 0x251   : > { %v2959_v42 = vmax.f32 %v2949_v55, %v809_v32  ;;  %v2973_v32 = vld [vmem:[#allocation3 + $0x58] sm:$0xff] }
 0x252   : > { %1320 = vmatpush1.xpose.msra.mxu1 %v2837_v39  ;;  %v3016_v39 = vld [vmem:[#allocation3 + $0x78] sm:$0xff] }
 0x253   : > { %1479 = vst.msk [vmem:[#allocation3 + $0x48] sm:$0xff] %vm297_vm1, %v2959_v42  ;;  %939 = vperm.xlu0 %2100, %v2959_v42   ;;  %1321 = vmatprep.subr.mxu1 %v2835_v38 }
 0x254   : > { %v812_v22 = vpop.xlane.xlu0 %811 }
 0x255   : > { %v2971_v40 = vmax.f32 %v2961_v34, %v812_v22  ;;  %v2985_v22 = vld [vmem:[#allocation3 + $0x60] sm:$0xff] }
 0x256   : > { %1322 = vmatpush1.xpose.msra.mxu1 %v2833_v37 }
 0x257   : > { %1480 = vst.msk [vmem:[#allocation3 + $0x50] sm:$0xff] %vm297_vm1, %v2971_v40  ;;  %944 = vperm.xlu1 %2101, %v2971_v40   ;;  %1323 = vmatprep.subr.mxu1 %v2831_v36  ;;  %v2996_v36 = vld [vmem:[#allocation3 + $0x68] sm:$0xff] }
 0x258   : > { %v815_v28 = vpop.xlane.xlu1 %814 }
 0x259   : > { %v2983_v38 = vmax.f32 %v2973_v32, %v815_v28 }
 0x25a   : > { %1324 = vmatpush1.xpose.msra.mxu1 %v2829_v35 }
 0x25b   : > { %1481 = vst.msk [vmem:[#allocation3 + $0x58] sm:$0xff] %vm297_vm1, %v2983_v38  ;;  %949 = vperm.xlu0 %2100, %v2983_v38  }
 0x25c   : > { %v818_v16 = vpop.xlane.xlu0 %817 }
 0x25d   : > { %v2994_v49 = vmax.f32 %v2985_v22, %v818_v16 }
 0x25f   : > { %1482 = vst.msk [vmem:[#allocation3 + $0x60] sm:$0xff] %vm297_vm1, %v2994_v49  ;;  %954 = vperm.xlu1 %2101, %v2994_v49  }
 0x260   : > { %v821_v35 = vpop.xlane.xlu1 %820 }
 0x261   : > { %v3004_v47 = vmax.f32 %v2996_v36, %v821_v35 }
 0x263   : > { %1483 = vst.msk [vmem:[#allocation3 + $0x68] sm:$0xff] %vm297_vm1, %v3004_v47  ;;  %959 = vperm.xlu0 %2100, %v3004_v47  }
 0x264   : > { %v824_v43 = vpop.xlane.xlu0 %823 }
 0x265   : > { %v3014_v41 = vmax.f32 %v3006_v45, %v824_v43 }
 0x267   : > { %1484 = vst.msk [vmem:[#allocation3 + $0x70] sm:$0xff] %vm297_vm1, %v3014_v41  ;;  %964 = vperm.xlu1 %2101, %v3014_v41  }
 0x268   : > { %v827_v37 = vpop.xlane.xlu1 %826 }
 0x269   : > { %v3024_v28 = vmax.f32 %v3016_v39, %v827_v37 }
 0x26b   : > { %1485 = vst.msk [vmem:[#allocation3 + $0x78] sm:$0xff] %vm297_vm1, %v3024_v28  ;;  %969 = vperm.xlu0 %2100, %v3024_v28  }
 0x2aa   : > { %v895_v43 = vpop.permute.xlu0 %894 }
 0x2ab   : > { %v972_v35 = vsub.f32 %v2733_v50, %v895_v43  ;;  %v973_v30 = vsub.f32 %v2735_v51, %v895_v43 }
 0x2ad   : > { %v1004_v33 = vmul.f32 1.442695, %v972_v35  ;;  %v1006_v13 = vmul.f32 1.442695, %v973_v30 }
 0x2ae   : > { %v900_v29 = vpop.permute.xlu1 %899 }
 0x2af   : > { %2102 = vpow2.f32 %v1004_v33  ;;  %v974_v37 = vsub.f32 %v2739_v53, %v900_v29  ;;  %v975_v19 = vsub.f32 %v2741_v54, %v900_v29 }
 0x2b0   : > { %2104 = vpow2.f32 %v1006_v13 }
 0x2b1   : > { %v1008_v16 = vmul.f32 1.442695, %v974_v37  ;;  %v1010_v10 = vmul.f32 1.442695, %v975_v19 }
 0x2b2   : > { %v905_v25 = vpop.permute.xlu1 %904 }
 0x2b3   : > { %2106 = vpow2.f32 %v1008_v16  ;;  %v976_v4 = vsub.f32 %v2745_v56, %v905_v25  ;;  %v977_v31 = vsub.f32 %v2747_v57, %v905_v25 }
 0x2b4   : > { %2108 = vpow2.f32 %v1010_v10 }
 0x2b5   : > { %v1012_v50 = vmul.f32 1.442695, %v976_v4  ;;  %v1014_v51 = vmul.f32 1.442695, %v977_v31 }
 0x2b6   : > { %v910_v35 = vpop.permute.xlu1 %909 }
 0x2b7   : > { %2110 = vpow2.f32 %v1012_v50  ;;  %v978_v30 = vsub.f32 %v2751_v59, %v910_v35  ;;  %v979_v53 = vsub.f32 %v2753_v60, %v910_v35 }
 0x2b8   : > { %2112 = vpow2.f32 %v1014_v51 }
 0x2b9   : > { %v1016_v54 = vmul.f32 1.442695, %v978_v30  ;;  %v1018_v29 = vmul.f32 1.442695, %v979_v53 }
 0x2ba   : > { %v915_v33 = vpop.permute.xlu1 %914 }
 0x2bb   : > { %2114 = vpow2.f32 %v1016_v54  ;;  %v980_v13 = vsub.f32 %v2757_v62, %v915_v33  ;;  %v981_v56 = vsub.f32 %v2759_v0, %v915_v33 }
 0x2bc   : > { %v2103_v19 = vpop.eup %2102  ;;  %2116 = vpow2.f32 %v1018_v29 }
 0x2bd   : > { %v2105_v57 = vpop.eup %2104  ;;  %v1020_v10 = vmul.f32 1.442695, %v980_v13  ;;  %v1022_v4 = vmul.f32 1.442695, %v981_v56 }
 0x2be   : > { %1357 = vmatprep.mubr.f32.mxu1 %v2105_v57  ;;  %v920_v25 = vpop.permute.xlu1 %919  ;;  %v3041_v31 = vadd.f32 %v2105_v57, %v2103_v19 }
 0x2bf   : > { %2118 = vpow2.f32 %v1020_v10  ;;  %v982_v59 = vsub.f32 %v2763_v2, %v920_v25  ;;  %v983_v60 = vsub.f32 %v2765_v3, %v920_v25  ;;  %1358 = vmatmul.mubr.f32.vlgmr.msra.gmra.mxu1 %v2103_v19 }
 0x2c0   : > { %v2107_v16 = vpop.eup %2106  ;;  %2120 = vpow2.f32 %v1022_v4 }
 0x2c1   : > { %v2109_v62 = vpop.eup %2108  ;;  %v1024_v43 = vmul.f32 1.442695, %v982_v59  ;;  %v1026_v0 = vmul.f32 1.442695, %v983_v60 }
 0x2c2   : > { %1362 = vmatprep.mubr.f32.mxu1 %v2109_v62  ;;  %v925_v37 = vpop.permute.xlu1 %924  ;;  %v3045_v50 = vadd.f32 %v2109_v62, %v2107_v16 }
 0x2c3   : > { %2122 = vpow2.f32 %v1024_v43  ;;  %v984_v51 = vsub.f32 %v2769_v5, %v925_v37  ;;  %v985_v35 = vsub.f32 %v2771_v6, %v925_v37  ;;  %1363 = vmatmul.mubr.f32.gmra.mxu1 %v2107_v16 }
 0x2c4   : > { %v2111_v30 = vpop.eup %2110  ;;  %2124 = vpow2.f32 %v1026_v0 }
 0x2c5   : > { %v2113_v2 = vpop.eup %2112  ;;  %v1028_v3 = vmul.f32 1.442695, %v984_v51  ;;  %v1030_v53 = vmul.f32 1.442695, %v985_v35 }
 0x2c6   : > { %1367 = vmatprep.mubr.f32.mxu1 %v2113_v2  ;;  %v930_v54 = vpop.permute.xlu1 %929  ;;  %v3049_v29 = vadd.f32 %v2113_v2, %v2111_v30 }
 0x2c7   : > { %2126 = vpow2.f32 %v1028_v3  ;;  %v986_v33 = vsub.f32 %v2775_v8, %v930_v54  ;;  %v987_v13 = vsub.f32 %v2777_v9, %v930_v54  ;;  %1368 = vmatmul.mubr.f32.gmra.mxu1 %v2111_v30 }
 0x2c8   : > { %v2115_v56 = vpop.eup %2114  ;;  %2128 = vpow2.f32 %v1030_v53 }
 0x2c9   : > { %v2117_v5 = vpop.eup %2116  ;;  %v1032_v6 = vmul.f32 1.442695, %v986_v33  ;;  %v1034_v19 = vmul.f32 1.442695, %v987_v13 }
 0x2ca   : > { %1372 = vmatprep.mubr.f32.mxu1 %v2117_v5  ;;  %v935_v57 = vpop.permute.xlu1 %934  ;;  %v3053_v10 = vadd.f32 %v2117_v5, %v2115_v56 }
 0x2cb   : > { %2130 = vpow2.f32 %v1032_v6  ;;  %v988_v4 = vsub.f32 %v2781_v11, %v935_v57  ;;  %v989_v25 = vsub.f32 %v2783_v12, %v935_v57  ;;  %1373 = vmatmul.mubr.f32.gmra.mxu1 %v2115_v56 }
 0x2cc   : > { %v2119_v59 = vpop.eup %2118  ;;  %2132 = vpow2.f32 %v1034_v19 }
 0x2cd   : > { %v2121_v8 = vpop.eup %2120  ;;  %v1036_v9 = vmul.f32 1.442695, %v988_v4  ;;  %v1038_v60 = vmul.f32 1.442695, %v989_v25 }
 0x2ce   : > { %1377 = vmatprep.mubr.f32.mxu1 %v2121_v8  ;;  %v940_v16 = vpop.permute.xlu0 %939  ;;  %v3057_v62 = vadd.f32 %v2121_v8, %v2119_v59 }
 0x2cf   : > { %2134 = vpow2.f32 %v1036_v9  ;;  %1378 = vmatmul.mubr.f32.gmra.mxu1 %v2119_v59  ;;  %v990_v43 = vsub.f32 %v2787_v14, %v940_v16  ;;  %v991_v0 = vsub.f32 %v2789_v15, %v940_v16 }
 0x2d0   : > { %v2123_v37 = vpop.eup %2122  ;;  %2136 = vpow2.f32 %v1038_v60 }
 0x2d1   : > { %v2125_v11 = vpop.eup %2124  ;;  %v1040_v12 = vmul.f32 1.442695, %v990_v43  ;;  %v1042_v51 = vmul.f32 1.442695, %v991_v0 }
 0x2d2   : > { %1382 = vmatprep.mubr.f32.mxu1 %v2125_v11  ;;  %v945_v35 = vpop.permute.xlu1 %944  ;;  %v3061_v30 = vadd.f32 %v2125_v11, %v2123_v37  ;;  %v3364_v11 = vld [vmem:[#allocation18_spill] sm:$0xff] }
 0x2d3   : > { %2138 = vpow2.f32 %v1040_v12  ;;  %v992_v2 = vsub.f32 %v2793_v17, %v945_v35  ;;  %v993_v3 = vsub.f32 %v2795_v18, %v945_v35  ;;  %1383 = vmatmul.mubr.f32.gmra.mxu1 %v2123_v37 }
 0x2d4   : > { %v2127_v53 = vpop.eup %2126  ;;  %2140 = vpow2.f32 %v1042_v51  ;;  %v3365_v51 = vld [vmem:[#allocation19_spill] sm:$0xff] }
 0x2d5   : > { %v2129_v14 = vpop.eup %2128  ;;  %v1044_v54 = vmul.f32 1.442695, %v992_v2  ;;  %v1046_v15 = vmul.f32 1.442695, %v993_v3 }
 0x2d6   : > { %1387 = vmatprep.mubr.f32.mxu1 %v2129_v14  ;;  %v950_v33 = vpop.permute.xlu0 %949  ;;  %v3065_v13 = vadd.f32 %v2129_v14, %v2127_v53  ;;  %v3366_v14 = vld [vmem:[#allocation20_spill] sm:$0xff] }
 0x2d7   : > { %2142 = vpow2.f32 %v1044_v54  ;;  %1388 = vmatmul.mubr.f32.gmra.mxu1 %v2127_v53  ;;  %v994_v56 = vsub.f32 %v2799_v20, %v950_v33  ;;  %v995_v5 = vsub.f32 %v2801_v21, %v950_v33 }
 0x2d8   : > { %v3069_v6 = vpop.eup %2130  ;;  %2144 = vpow2.f32 %v1046_v15  ;;  %v3367_v15 = vld [vmem:[#allocation21_spill] sm:$0xff] }
 0x2d9   : > { %v3071_v17 = vpop.eup %2132  ;;  %v1048_v18 = vmul.f32 1.442695, %v994_v56  ;;  %v1050_v19 = vmul.f32 1.442695, %v995_v5 }
 0x2da   : > { %1392 = vmatprep.mubr.f32.mxu1 %v3071_v17  ;;  %v955_v57 = vpop.permute.xlu1 %954 }
 0x2db   : > { %2146 = vpow2.f32 %v1048_v18  ;;  %v996_v4 = vsub.f32 %v2805_v23, %v955_v57  ;;  %v997_v25 = vsub.f32 %v2807_v24, %v955_v57  ;;  %1393 = vmatmul.mubr.f32.gmra.mxu1 %v3069_v6 }
 0x2dc   : > { %v3077_v20 = vpop.eup %2134  ;;  %2148 = vpow2.f32 %v1050_v19 }
 0x2dd   : > { %v3079_v21 = vpop.eup %2136  ;;  %v1052_v59 = vmul.f32 1.442695, %v996_v4  ;;  %v1054_v8 = vmul.f32 1.442695, %v997_v25 }
 0x2de   : > { %1397 = vmatprep.mubr.f32.mxu1 %v3079_v21  ;;  %v960_v9 = vpop.permute.xlu0 %959 }
 0x2df   : > { %2150 = vpow2.f32 %v1052_v59  ;;  %1398 = vmatmul.mubr.f32.gmra.mxu1 %v3077_v20  ;;  %v998_v60 = vsub.f32 %v2811_v26, %v960_v9  ;;  %v999_v23 = vsub.f32 %v2813_v27, %v960_v9 }
 0x2e0   : > { %v2139_v24 = vpop.eup %2138  ;;  %2152 = vpow2.f32 %v1054_v8 }
 0x2e1   : > { %v2141_v16 = vpop.eup %2140  ;;  %v1056_v43 = vmul.f32 1.442695, %v998_v60  ;;  %v1058_v0 = vmul.f32 1.442695, %v999_v23 }
 0x2e2   : > { %1402 = vmatprep.mubr.f32.mxu1 %v2141_v16  ;;  %v965_v37 = vpop.permute.xlu1 %964 }
 0x2e3   : > { %2154 = vpow2.f32 %v1056_v43  ;;  %v1000_v12 = vsub.f32 %v3364_v11, %v965_v37  ;;  %v1001_v35 = vsub.f32 %v3365_v51, %v965_v37  ;;  %1403 = vmatmul.mubr.f32.gmra.mxu1 %v2139_v24 }
 0x2e4   : > { %v2143_v2 = vpop.eup %2142  ;;  %2156 = vpow2.f32 %v1058_v0 }
 0x2e5   : > { %v2145_v3 = vpop.eup %2144  ;;  %v1060_v53 = vmul.f32 1.442695, %v1000_v12  ;;  %v1062_v26 = vmul.f32 1.442695, %v1001_v35  ;;  %v1127_v35 = vadd.f32 %v2141_v16, %v2139_v24  ;;  %v3368_v24 = vsub.f32 %v3016_v39, %v3024_v28 }
 0x2e6   : > { %1407 = vmatprep.mubr.f32.mxu1 %v2145_v3  ;;  %v970_v27 = vpop.permute.xlu0 %969  ;;  %v1130_v51 = vadd.f32 %v2145_v3, %v2143_v2  ;;  %v3371_v39 = vsub.f32 %v2985_v22, %v2994_v49  ;;  %v3374_v49 = vsub.f32 %v2949_v55, %v2959_v42  ;;  %v3377_v55 = vsub.f32 %v2913_v7, %v2923_v48  ;;  %v3381_v48 = vld [vmem:[#allocation28_spill] sm:$0xff]  ;;  %v3382_v3 = vld [vmem:[#allocation29_spill] sm:$0xff] }
 0x2e7   : > { %2158 = vpow2.f32 %v1060_v53  ;;  %1408 = vmatmul.mubr.f32.gmra.mxu1 %v2143_v2  ;;  %v1002_v54 = vsub.f32 %v3366_v14, %v970_v27  ;;  %v1003_v33 = vsub.f32 %v3367_v15, %v970_v27  ;;  %v1124_v53 = vadd.f32 %v3079_v21, %v3077_v20 }
 0x2e8   : > { %v2147_v56 = vpop.eup %2146  ;;  %2160 = vpow2.f32 %v1062_v26  ;;  %v1121_v26 = vadd.f32 %v3071_v17, %v3069_v6  ;;  %v890_v16 = vmul.f32 1.442695, %v3368_v24  ;;  %v3369_v6 = vsub.f32 %v2996_v36, %v3004_v47  ;;  %v1081_v24 = vld [vmem:[#allocation4 + $0x68] sm:$0xff] }
 0x2e9   : > { %v2149_v5 = vpop.eup %2148  ;;  %v1064_v18 = vmul.f32 1.442695, %v1002_v54  ;;  %v1066_v19 = vmul.f32 1.442695, %v1003_v33  ;;  %v884_v28 = vmul.f32 1.442695, %v3371_v39  ;;  %v3383_v27 = vsub.f32 %v3381_v48, %v3382_v3 }
 0x2ea   : > { %1412 = vmatprep.mubr.f32.mxu1 %v2149_v5  ;;  %v1133_v12 = vadd.f32 %v2149_v5, %v2147_v56  ;;  %v886_v17 = vmul.f32 1.442695, %v3369_v6  ;;  %v878_v22 = vmul.f32 1.442695, %v3374_v49  ;;  %v872_v42 = vmul.f32 1.442695, %v3377_v55 }
 0x2eb   : > { %2162 = vpow2.f32 %v1064_v18  ;;  %1413 = vmatmul.mubr.f32.gmra.mxu1 %v2147_v56  ;;  %v866_v14 = vmul.f32 1.442695, %v3383_v27  ;;  %v3385_v54 = vld [vmem:[#allocation27_spill] sm:$0xff]  ;;  %v3387_v56 = vld [vmem:[#allocation24_spill] sm:$0xff]  ;;  %v3388_v5 = vld [vmem:[#allocation25_spill] sm:$0xff] }
 0x2ec   : > { %v2151_v57 = vpop.eup %2150  ;;  %2164 = vpow2.f32 %v1066_v19  ;;  %v3389_v18 = vsub.f32 %v3387_v56, %v3388_v5  ;;  %v1079_v39 = vld [vmem:[#allocation4 + $0x58] sm:$0xff]  ;;  %v1074_v5 = vld [vmem:[#allocation4 + $0x30] sm:$0xff] }
 0x2ed   : > { %v2153_v4 = vpop.eup %2152  ;;  %2166 = vpow2.f32 %v890_v16 }
 0x2ee   : > { %1417 = vmatprep.mubr.f32.mxu1 %v2153_v4  ;;  %v1136_v11 = vadd.f32 %v2153_v4, %v2151_v57  ;;  %2168 = vpow2.f32 %v886_v17  ;;  %v862_v19 = vmul.f32 1.442695, %v3389_v18  ;;  %v3390_v4 = vld [vmem:[#allocation22_spill] sm:$0xff] }
 0x2ef   : > { %1418 = vmatmul.mubr.f32.gmra.mxu1 %v2151_v57 }
 0x2f0   : > { %v2155_v25 = vpop.eup %2154 }
 0x2f1   : > { %v2157_v59 = vpop.eup %2156 }
 0x2f2   : > { %1422 = vmatprep.mubr.f32.mxu1 %v2157_v59  ;;  %v1139_v0 = vadd.f32 %v2157_v59, %v2155_v25 }
 0x2f3   : > { %1423 = vmatmul.mubr.f32.gmra.mxu1 %v2155_v25  ;;  %v3391_v25 = vld [vmem:[#allocation23_spill] sm:$0xff] }
 0x2f4   : > { %v2159_v8 = vpop.eup %2158  ;;  %v3392_v59 = vsub.f32 %v3390_v4, %v3391_v25 }
 0x2f5   : > { %v2161_v9 = vpop.eup %2160 }
 0x2f6   : > { %1427 = vmatprep.mubr.f32.mxu1 %v2161_v9  ;;  %v1142_v60 = vadd.f32 %v2161_v9, %v2159_v8 }
 0x2f7   : > { %1428 = vmatmul.mubr.f32.gmra.mxu1 %v2159_v8  ;;  %v860_v8 = vmul.f32 1.442695, %v3392_v59 }
 0x2f8   : > { %v2163_v23 = vpop.eup %2162  ;;  %1143 = vadd.xlane.f32.xlu0 %v1142_v60 }
 0x2f9   : > { %v2165_v43 = vpop.eup %2164 }
 0x2fa   : > { %1432 = vmatprep.mubr.f32.mxu1 %v2165_v43  ;;  %v1145_v37 = vadd.f32 %v2165_v43, %v2163_v23 }
 0x2fb   : > { %1433 = vmatmul.mubr.f32.gmra.mxu1 %v2163_v23 }
 0x2fc   : > { %1140 = vadd.xlane.f32.xlu0 %v1139_v0  ;;  %1146 = vadd.xlane.f32.xlu1 %v1145_v37  ;;  %v1082_v37 = vld [vmem:[#allocation4 + $0x70] sm:$0xff] }
 0x300   : > { %1137 = vadd.xlane.f32.xlu0 %v1136_v11  ;;  %1134 = vadd.xlane.f32.xlu1 %v1133_v12 }
 0x304   : > { %1131 = vadd.xlane.f32.xlu0 %v1130_v51  ;;  %1128 = vadd.xlane.f32.xlu1 %v1127_v35 }
 0x308   : > { %1125 = vadd.xlane.f32.xlu0 %v1124_v53  ;;  %1122 = vadd.xlane.f32.xlu1 %v1121_v26  ;;  %v1083_v53 = vld [vmem:[#allocation4 + $0x78] sm:$0xff] }
 0x30c   : > { %1119 = vadd.xlane.f32.xlu0 %v3065_v13  ;;  %1116 = vadd.xlane.f32.xlu1 %v3061_v30 }
 0x310   : > { %1113 = vadd.xlane.f32.xlu0 %v3057_v62  ;;  %1110 = vadd.xlane.f32.xlu1 %v3053_v10  ;;  %v3370_v62 = vsub.f32 %v3006_v45, %v3014_v41  ;;  %v3373_v45 = vsub.f32 %v2961_v34, %v2971_v40  ;;  %v3376_v34 = vsub.f32 %v2925_v61, %v2935_v46  ;;  %v3379_v61 = vld [vmem:[#allocation30_spill] sm:$0xff] }
 0x311   : > { %v3380_v46 = vsub.f32 %v2892_v63, %v3379_v61  ;;  %v1075_v61 = vld [vmem:[#allocation4 + $0x38] sm:$0xff] }
 0x312   : > { %v888_v10 = vmul.f32 1.442695, %v3370_v62  ;;  %v880_v41 = vmul.f32 1.442695, %v3373_v45  ;;  %v874_v40 = vmul.f32 1.442695, %v3376_v34 }
 0x313   : > { %v868_v2 = vmul.f32 1.442695, %v3380_v46 }
 0x314   : > { %1107 = vadd.xlane.f32.xlu0 %v3049_v29  ;;  %1104 = vadd.xlane.f32.xlu1 %v3045_v50  ;;  %2170 = vpow2.f32 %v888_v10  ;;  %v3112_v29 = vpop.eup %2166  ;;  %v3372_v50 = vsub.f32 %v2973_v32, %v2983_v38  ;;  %v3375_v32 = vsub.f32 %v2937_v1, %v2947_v44  ;;  %v3378_v1 = vsub.f32 %v2902_v58, %v2911_v52  ;;  %v3384_v52 = vld [vmem:[#allocation26_spill] sm:$0xff] }
 0x315   : > { %2172 = vpow2.f32 %v884_v28  ;;  %v3118_v36 = vpop.eup %2168  ;;  %v3386_v15 = vsub.f32 %v3384_v52, %v3385_v54  ;;  %v1099_v6 = vmul.f32 %v3112_v29, %v1083_v53 }
 0x316   : > { %v882_v47 = vmul.f32 1.442695, %v3372_v50  ;;  %v876_v38 = vmul.f32 1.442695, %v3375_v32  ;;  %v870_v44 = vmul.f32 1.442695, %v3378_v1  ;;  %v1097_v10 = vmul.f32 %v3118_v36, %v1081_v24 }
 0x317   : > { %v864_v33 = vmul.f32 1.442695, %v3386_v15  ;;  %v1077_v32 = vld [vmem:[#allocation4 + $0x48] sm:$0xff] }
 0x318   : > { %1101 = vadd.xlane.f32.xlu0 %v3041_v31  ;;  %2174 = vpow2.f32 %v882_v47  ;;  %v1080_v47 = vld [vmem:[#allocation4 + $0x60] sm:$0xff] }
 0x319   : > { %2176 = vpow2.f32 %v880_v41 }
 0x31a   : > { %2178 = vpow2.f32 %v878_v22 }
 0x31b   : > { %2180 = vpow2.f32 %v876_v38 }
 0x31c   : > { %2182 = vpow2.f32 %v874_v40 }
 0x31d   : > { %2184 = vpow2.f32 %v872_v42 }
 0x31e   : > { %2186 = vpow2.f32 %v870_v44 }
 0x31f   : > { %2188 = vpow2.f32 %v868_v2  ;;  %v1076_v2 = vld [vmem:[#allocation4 + $0x40] sm:$0xff] }
 0x320   : > { %2190 = vpow2.f32 %v866_v14 }
 0x321   : > { %v2171_v31 = vpop.eup %2170  ;;  %2192 = vpow2.f32 %v864_v33 }
 0x322   : > { %v3130_v30 = vpop.eup %2172  ;;  %2194 = vpow2.f32 %v862_v19  ;;  %v1098_v12 = vmul.f32 %v2171_v31, %v1082_v37 }
 0x323   : > { %2196 = vpow2.f32 %v860_v8 }
 0x325   : > { %1274 = vperm.xlu1 %2101, %v3112_v29   ;;  %v2175_v13 = vpop.eup %2174  ;;  %v1096_v29 = vmul.f32 %v3130_v30, %v1080_v47 }
 0x326   : > { %v3139_v20 = vpop.eup %2176  ;;  %v1095_v49 = vmul.f32 %v2175_v13, %v1079_v39  ;;  %v1070_v39 = vld [vmem:[#allocation4 + $0x10] sm:$0xff] }
 0x327   : > { %v3145_v21 = vpop.eup %2178 }
 0x328   : > { %v3151_v7 = vpop.eup %2180  ;;  %v1093_v42 = vmul.f32 %v3145_v21, %v1077_v32  ;;  %v1068_v32 = vld [vmem:[#allocation4] sm:$0xff] }
 0x329   : > { %1264 = vperm.xlu1 %2101, %v3118_v36   ;;  %v3157_v58 = vpop.eup %2182  ;;  %v1078_v36 = vld [vmem:[#allocation4 + $0x50] sm:$0xff]  ;;  %v1092_v54 = vmul.f32 %v3151_v7, %v1076_v2 }
 0x32a   : > { %v3163_v63 = vpop.eup %2184  ;;  %v1094_v44 = vmul.f32 %v3139_v20, %v1078_v36  ;;  %v1091_v14 = vmul.f32 %v3157_v58, %v1075_v61 }
 0x32b   : > { %v3169_v57 = vpop.eup %2186  ;;  %v1090_v59 = vmul.f32 %v3163_v63, %v1074_v5 }
 0x32c   : > { %v3175_v9 = vpop.eup %2188 }
 0x32d   : > { %v3178_v60 = vpop.eup %2190 }
 0x32e   : > { %1269 = vperm.xlu0 %2100, %v2171_v31   ;;  %v3181_v23 = vpop.eup %2192 }
 0x32f   : > { %v3184_v43 = vpop.eup %2194 }
 0x330   : > { %v3187_v0 = vpop.eup %2196 }
 0x332   : > { %1259 = vperm.xlu0 %2100, %v3130_v30  }
 0x336   : > { %1254 = vperm.xlu0 %2100, %v2175_v13  }
 0x33a   : > { %1249 = vperm.xlu0 %2100, %v3139_v20   ;;  %v1073_v20 = vld [vmem:[#allocation4 + $0x28] sm:$0xff] }
 0x33b   : > { %v1089_v4 = vmul.f32 %v3169_v57, %v1073_v20 }
 0x33e   : > { %1244 = vperm.xlu0 %2100, %v3145_v21  }
 0x342   : > { %1239 = vperm.xlu0 %2100, %v3151_v7   ;;  %v1071_v7 = vld [vmem:[#allocation4 + $0x18] sm:$0xff] }
 0x346   : > { %1234 = vperm.xlu0 %2100, %v3157_v58  }
 0x34a   : > { %1229 = vperm.xlu0 %2100, %v3163_v63   ;;  %v1069_v63 = vld [vmem:[#allocation4 + $0x8] sm:$0xff] }
 0x34b   : > { %v1085_v47 = vmul.f32 %v3184_v43, %v1069_v63 }
 0x34e   : > { %1224 = vperm.xlu0 %2100, %v3169_v57  }
 0x352   : > { %1219 = vperm.xlu0 %2100, %v3175_v9  }
 0x356   : > { %1214 = vperm.xlu0 %2100, %v3178_v60  }
 0x35a   : > { %1209 = vperm.xlu0 %2100, %v3181_v23  }
 0x35e   : > { %1204 = vperm.xlu0 %2100, %v3184_v43  }
 0x362   : > { %1199 = vperm.xlu0 %2100, %v3187_v0  }
 0x37f   : > { %v3190_v11 = vpop.f32.mrf.mxu1 }
 0x381   : > { %v1361_v51 = vpop.f32.mrf.mxu1  ;;  %v1144_v35 = vpop.xlane.xlu0 %1143 }
 0x382   : > { %v1162_v26 = vadd.f32 %v1144_v35, %v1098_v12  ;;  %v1072_v51 = vld [vmem:[#allocation4 + $0x20] sm:$0xff] }
 0x383   : > { %v3192_v16 = vpop.f32.mrf.mxu1 }
 0x384   : > { %1179 = vst.msk [vmem:[#allocation4 + $0x70] sm:$0xff] %vm297_vm1, %v1162_v26  ;;  %v1087_v26 = vmul.f32 %v3178_v60, %v1071_v7 }
 0x385   : > { %v1366_v17 = vpop.f32.mrf.mxu1  ;;  %v1147_v62 = vpop.xlane.xlu1 %1146 }
 0x386   : > { %v1163_v28 = vadd.f32 %v1147_v62, %v1099_v6  ;;  %v1141_v50 = vpop.xlane.xlu0 %1140  ;;  %v1088_v6 = vmul.f32 %v3175_v9, %v1072_v51  ;;  %v1086_v9 = vmul.f32 %v3181_v23, %v1070_v39 }
 0x387   : > { %v1161_v45 = vadd.f32 %v1141_v50, %v1097_v10  ;;  %v3197_v41 = vpop.f32.mrf.mxu1 }
 0x388   : > { %1180 = vst.msk [vmem:[#allocation4 + $0x78] sm:$0xff] %vm297_vm1, %v1163_v28 }
 0x389   : > { %1178 = vst.msk [vmem:[#allocation4 + $0x68] sm:$0xff] %vm297_vm1, %v1161_v45  ;;  %v1371_v22 = vpop.f32.mrf.mxu1  ;;  %v1135_v31 = vpop.xlane.xlu1 %1134 }
 0x38a   : > { %v1159_v38 = vadd.f32 %v1135_v31, %v1095_v49  ;;  %v1138_v34 = vpop.xlane.xlu0 %1137 }
 0x38b   : > { %v1160_v40 = vadd.f32 %v1138_v34, %v1096_v29  ;;  %v3202_v55 = vpop.f32.mrf.mxu1  ;;  %v1519_v15 = vld [vmem:[#allocation4 + $0x70] sm:$0xff] }
 0x38c   : > { %1176 = vst.msk [vmem:[#allocation4 + $0x58] sm:$0xff] %vm297_vm1, %v1159_v38 }
 0x38d   : > { %1177 = vst.msk [vmem:[#allocation4 + $0x60] sm:$0xff] %vm297_vm1, %v1160_v40  ;;  %v1376_v13 = vpop.f32.mrf.mxu1  ;;  %v1129_v1 = vpop.xlane.xlu1 %1128 }
 0x38e   : > { %v1157_v46 = vadd.f32 %v1129_v1, %v1093_v42  ;;  %v1132_v30 = vpop.xlane.xlu0 %1131  ;;  %v1084_v42 = vmul.f32 %v3187_v0, %v1068_v32 }
 0x38f   : > { %v1158_v48 = vadd.f32 %v1132_v30, %v1094_v44  ;;  %v3208_v3 = vpop.f32.mrf.mxu1  ;;  %v1520_v27 = vld [vmem:[#allocation4 + $0x78] sm:$0xff] }
 0x390   : > { %1174 = vst.msk [vmem:[#allocation4 + $0x48] sm:$0xff] %vm297_vm1, %v1157_v46  ;;  %2198 = vrcp.f32 %v1520_v27  ;;  %v1518_v8 = vld [vmem:[#allocation4 + $0x68] sm:$0xff] }
 0x391   : > { %1175 = vst.msk [vmem:[#allocation4 + $0x50] sm:$0xff] %vm297_vm1, %v1158_v48  ;;  %v1381_v21 = vpop.f32.mrf.mxu1  ;;  %v1123_v52 = vpop.xlane.xlu1 %1122  ;;  %2200 = vrcp.f32 %v1519_v15 }
 0x392   : > { %v1155_v33 = vadd.f32 %v1123_v52, %v1091_v14  ;;  %v1126_v56 = vpop.xlane.xlu0 %1125  ;;  %2202 = vrcp.f32 %v1518_v8 }
 0x393   : > { %v1156_v18 = vadd.f32 %v1126_v56, %v1092_v54  ;;  %v3214_v19 = vpop.f32.mrf.mxu1  ;;  %v1516_v45 = vld [vmem:[#allocation4 + $0x58] sm:$0xff] }
 0x394   : > { %1172 = vst.msk [vmem:[#allocation4 + $0x38] sm:$0xff] %vm297_vm1, %v1155_v33  ;;  %v1517_v17 = vld [vmem:[#allocation4 + $0x60] sm:$0xff] }
 0x395   : > { %1173 = vst.msk [vmem:[#allocation4 + $0x40] sm:$0xff] %vm297_vm1, %v1156_v18  ;;  %v1386_v58 = vpop.f32.mrf.mxu1  ;;  %v1117_v25 = vpop.xlane.xlu1 %1116  ;;  %2204 = vrcp.f32 %v1517_v17 }
 0x396   : > { %v1153_v37 = vadd.f32 %v1117_v25, %v1089_v4  ;;  %v1120_v12 = vpop.xlane.xlu0 %1119  ;;  %2206 = vrcp.f32 %v1516_v45 }
 0x397   : > { %v1154_v35 = vadd.f32 %v1120_v12, %v1090_v59  ;;  %v3220_v53 = vpop.f32.mrf.mxu1  ;;  %v1514_v61 = vld [vmem:[#allocation4 + $0x48] sm:$0xff] }
 0x398   : > { %1170 = vst.msk [vmem:[#allocation4 + $0x28] sm:$0xff] %vm297_vm1, %v1153_v37  ;;  %v1515_v36 = vld [vmem:[#allocation4 + $0x50] sm:$0xff] }
 0x399   : > { %1171 = vst.msk [vmem:[#allocation4 + $0x30] sm:$0xff] %vm297_vm1, %v1154_v35  ;;  %v1391_v57 = vpop.f32.mrf.mxu1  ;;  %v1111_v24 = vpop.xlane.xlu1 %1110  ;;  %2208 = vrcp.f32 %v1515_v36 }
 0x39a   : > { %v1151_v62 = vadd.f32 %v1111_v24, %v1087_v26  ;;  %v1114_v10 = vpop.xlane.xlu0 %1113  ;;  %2210 = vrcp.f32 %v1514_v61 }
 0x39b   : > { %v1152_v28 = vadd.f32 %v1114_v10, %v1088_v6  ;;  %v3226_v50 = vpop.f32.mrf.mxu1  ;;  %v1512_v52 = vld [vmem:[#allocation4 + $0x38] sm:$0xff] }
 0x39c   : > { %1168 = vst.msk [vmem:[#allocation4 + $0x18] sm:$0xff] %vm297_vm1, %v1151_v62  ;;  %v1513_v48 = vld [vmem:[#allocation4 + $0x40] sm:$0xff] }
 0x39d   : > { %v2199_v60 = vpop.eup %2198  ;;  %1169 = vst.msk [vmem:[#allocation4 + $0x20] sm:$0xff] %vm297_vm1, %v1152_v28  ;;  %v1396_v49 = vpop.f32.mrf.mxu1  ;;  %2212 = vrcp.f32 %v1513_v48  ;;  %v1665_v28 = vld [vmem:[#allocation10] sm:$0xff] }
 0x39e   : > { %v1105_v22 = vpop.xlane.xlu1 %1104  ;;  %v1108_v29 = vpop.xlane.xlu0 %1107  ;;  %1614 = vperm.xlu1 %2101, %v2199_v60   ;;  %1992 = vmatprep.mubr.f32.mxu1 %v1665_v28 }
 0x39f   : > { %v1149_v31 = vadd.f32 %v1105_v22, %v1085_v47  ;;  %v1150_v38 = vadd.f32 %v1108_v29, %v1086_v9  ;;  %v3232_v34 = vpop.f32.mrf.mxu1  ;;  %v2201_v43 = vpop.eup %2200  ;;  %v1510_v4 = vld [vmem:[#allocation4 + $0x28] sm:$0xff] }
 0x3a0   : > { %v2203_v44 = vpop.eup %2202  ;;  %v1511_v33 = vld [vmem:[#allocation4 + $0x30] sm:$0xff] }
 0x3a1   : > { %1166 = vst.msk [vmem:[#allocation4 + $0x8] sm:$0xff] %vm297_vm1, %v1149_v31  ;;  %1167 = vst.msk [vmem:[#allocation4 + $0x10] sm:$0xff] %vm297_vm1, %v1150_v38  ;;  %v1401_v40 = vpop.f32.mrf.mxu1 }
 0x3a2   : > { %v1102_v13 = vpop.xlane.xlu0 %1101  ;;  %1609 = vperm.xlu1 %2101, %v2201_v43   ;;  %v2205_v2 = vpop.eup %2204  ;;  %v1648_v43 = vld [vmem:[#allocation11 + $0x78] sm:$0xff] }
 0x3a3   : > { %v1148_v23 = vadd.f32 %v1102_v13, %v1084_v42  ;;  %v3237_v1 = vpop.f32.mrf.mxu1  ;;  %v2207_v21 = vpop.eup %2206  ;;  %v1508_v35 = vld [vmem:[#allocation4 + $0x18] sm:$0xff] }
 0x3a4   : > { %v1509_v7 = vld [vmem:[#allocation4 + $0x20] sm:$0xff]  ;;  %v1275_v22 = vpop.permute.xlu1 %1274 }
 0x3a5   : > { %1165 = vst.msk [vmem:[#allocation4] sm:$0xff] %vm297_vm1, %v1148_v23  ;;  %v1406_v46 = vpop.f32.mrf.mxu1  ;;  %v1292_v29 = vmul.f32 0.0, %v1275_v22 }
 0x3a6   : > { %1604 = vperm.xlu1 %2101, %v2203_v44   ;;  %v2209_v15 = vpop.eup %2208  ;;  %v1647_v44 = vld [vmem:[#allocation11 + $0x70] sm:$0xff] }
 0x3a7   : > { %v3240_v30 = vpop.f32.mrf.mxu1  ;;  %v2211_v18 = vpop.eup %2210 }
 0x3a8   : > { %v1507_v24 = vld [vmem:[#allocation4 + $0x10] sm:$0xff]  ;;  %v1506_v63 = vld [vmem:[#allocation4 + $0x8] sm:$0xff]  ;;  %v1265_v31 = vpop.permute.xlu1 %1264 }
 0x3a9   : > { %v1411_v27 = vpop.f32.mrf.mxu1  ;;  %v1270_v47 = vpop.permute.xlu0 %1269  ;;  %v1290_v46 = vmul.f32 0.0, %v1265_v31 }
 0x3aa   : > { %1599 = vperm.xlu1 %2101, %v2205_v2   ;;  %v2213_v59 = vpop.eup %2212  ;;  %v1291_v40 = vmul.f32 0.0, %v1270_v47 }
 0x3ab   : > { %v3242_v0 = vpop.f32.mrf.mxu1 }
 0x3ac   : > { %v1505_v14 = vld [vmem:[#allocation4] sm:$0xff] }
 0x3ad   : > { %2214 = vrcp.f32 %v1505_v14  ;;  %v1416_v54 = vpop.f32.mrf.mxu1  ;;  %v1260_v60 = vpop.permute.xlu0 %1259 }
 0x3ae   : > { %1594 = vperm.xlu1 %2101, %v2207_v21   ;;  %2216 = vrcp.f32 %v1512_v52  ;;  %v1289_v27 = vmul.f32 0.0, %v1260_v60  ;;  %v1646_v52 = vld [vmem:[#allocation11 + $0x68] sm:$0xff] }
 0x3af   : > { %v3244_v20 = vpop.f32.mrf.mxu1  ;;  %2218 = vrcp.f32 %v1511_v33 }
 0x3b0   : > { %2220 = vrcp.f32 %v1510_v4  ;;  %v1450_v33 = vadd.f32 %v3244_v20, %v1289_v27 }
 0x3b1   : > { %v1421_v56 = vpop.f32.mrf.mxu1  ;;  %2222 = vrcp.f32 %v1509_v7  ;;  %v1255_v45 = vpop.permute.xlu0 %1254 }
 0x3b2   : > { %1589 = vperm.xlu1 %2101, %v2209_v15   ;;  %2224 = vrcp.f32 %v1508_v35  ;;  %v1288_v56 = vmul.f32 0.0, %v1255_v45 }
 0x3b3   : > { %v3246_v5 = vpop.f32.mrf.mxu1  ;;  %2226 = vrcp.f32 %v1507_v24  ;;  %v1643_v24 = vld [vmem:[#allocation11 + $0x50] sm:$0xff] }
 0x3b4   : > { %2228 = vrcp.f32 %v1506_v63  ;;  %v1451_v14 = vadd.f32 %v3246_v5, %v1290_v46  ;;  %v1449_v5 = vadd.f32 %v3242_v0, %v1288_v56 }
 0x3b5   : > { %v1426_v58 = vpop.f32.mrf.mxu1  ;;  %v1250_v49 = vpop.permute.xlu0 %1249 }
 0x3b6   : > { %1584 = vperm.xlu1 %2101, %v2211_v18   ;;  %v1645_v58 = vld [vmem:[#allocation11 + $0x60] sm:$0xff]  ;;  %v1287_v7 = vmul.f32 0.0, %v1250_v49 }
 0x3b7   : > { %v1429_v25 = vpop.f32.mrf.mxu1 }
 0x3b8   : > { %v1452_v13 = vadd.f32 %v1429_v25, %v1291_v40 }
 0x3b9   : > { %v1431_v8 = vpop.f32.mrf.mxu1  ;;  %v1245_v9 = vpop.permute.xlu0 %1244 }
 0x3ba   : > { %v2215_v37 = vpop.eup %2214  ;;  %1579 = vperm.xlu1 %2101, %v2213_v59  }
 0x3bb   : > { %1539 = vperm.xlu0 %2100, %v2215_v37   ;;  %v1434_v12 = vpop.f32.mrf.mxu1  ;;  %v2217_v51 = vpop.eup %2216  ;;  %v1644_v37 = vld [vmem:[#allocation11 + $0x58] sm:$0xff] }
 0x3bc   : > { %v2219_v57 = vpop.eup %2218  ;;  %v1453_v32 = vadd.f32 %v1434_v12, %v1292_v29 }
 0x3bd   : > { %v1436_v26 = vpop.f32.mrf.mxu1  ;;  %v2221_v6 = vpop.eup %2220 }
 0x3be   : > { %1574 = vperm.xlu1 %2101, %v2217_v51   ;;  %v2223_v17 = vpop.eup %2222  ;;  %v1240_v38 = vpop.permute.xlu0 %1239  ;;  %v1286_v26 = vmul.f32 0.0, %v1245_v9 }
 0x3bf   : > { %v2225_v62 = vpop.eup %2224 }
 0x3c0   : > { %v2227_v10 = vpop.eup %2226 }
 0x3c1   : > { %v2229_v39 = vpop.eup %2228 }
 0x3c2   : > { %1569 = vperm.xlu1 %2101, %v2219_v57   ;;  %v1235_v48 = vpop.permute.xlu0 %1234  ;;  %v1448_v57 = vadd.f32 %v3240_v30, %v1287_v7  ;;  %v1641_v30 = vld [vmem:[#allocation11 + $0x40] sm:$0xff] }
 0x3c3   : > { %v1284_v60 = vmul.f32 0.0, %v1235_v48 }
 0x3c6   : > { %1564 = vperm.xlu1 %2101, %v2221_v6   ;;  %v1230_v4 = vpop.permute.xlu0 %1229 }
 0x3c7   : > { %v1283_v29 = vmul.f32 0.0, %v1230_v4 }
 0x3ca   : > { %1559 = vperm.xlu1 %2101, %v2223_v17   ;;  %v1225_v35 = vpop.permute.xlu0 %1224  ;;  %v1285_v17 = vmul.f32 0.0, %v1240_v38  ;;  %v1640_v38 = vld [vmem:[#allocation11 + $0x38] sm:$0xff] }
 0x3cb   : > { %v1282_v40 = vmul.f32 0.0, %v1225_v35 }
 0x3cc   : > { %v1446_v49 = vadd.f32 %v3232_v34, %v1285_v17 }
 0x3cd   : > { %v1443_v48 = vadd.f32 %v3214_v19, %v1282_v40 }
 0x3ce   : > { %1554 = vperm.xlu1 %2101, %v2225_v62   ;;  %v1220_v0 = vpop.permute.xlu0 %1219 }
 0x3cf   : > { %v1281_v46 = vmul.f32 0.0, %v1220_v0  ;;  %v1666_v0 = vld [vmem:[#allocation10 + $0x8] sm:$0xff] }
 0x3d2   : > { %1549 = vperm.xlu1 %2101, %v2227_v10   ;;  %v1447_v10 = vadd.f32 %v3237_v1, %v1286_v26  ;;  %v1215_v31 = vpop.permute.xlu0 %1214  ;;  %v1445_v1 = vadd.f32 %v3226_v50, %v1284_v60  ;;  %v1638_v50 = vld [vmem:[#allocation11 + $0x28] sm:$0xff] }
 0x3d6   : > { %1544 = vperm.xlu1 %2101, %v2229_v39   ;;  %v1642_v39 = vld [vmem:[#allocation11 + $0x48] sm:$0xff]  ;;  %v1210_v34 = vpop.permute.xlu0 %1209 }
 0x419   : > { %v1615_v36 = vpop.permute.xlu1 %1614 }
 0x41a   : > { %v1632_v42 = vmul.f32 %v1615_v36, %v1453_v32 }
 0x41c   : > { %v1664_v23 = vmul.f32 %v1648_v43, %v1632_v42 }
 0x41d   : > { %v1610_v61 = vpop.permute.xlu1 %1609 }
 0x41e   : > { %v1631_v2 = vmul.f32 %v1610_v61, %v1452_v13  ;;  %1960 = vmatprep.subr.mxu1 %v1664_v23  ;;  %v1444_v13 = vadd.f32 %v3220_v53, %v1283_v29  ;;  %v1442_v53 = vadd.f32 %v3208_v3, %v1281_v46 }
 0x41f   : > { %1961 = vmatpush3.xpose.msra.mxu1 %v1664_v23  ;;  %v1639_v23 = vld [vmem:[#allocation11 + $0x30] sm:$0xff] }
 0x420   : > { %v1663_v21 = vmul.f32 %v1647_v44, %v1631_v2 }
 0x421   : > { %v1605_v54 = vpop.permute.xlu1 %1604 }
 0x422   : > { %v1630_v15 = vmul.f32 %v1605_v54, %v1451_v14  ;;  %1962 = vmatprep.subr.mxu1 %v1663_v21 }
 0x423   : > { %1963 = vmatpush3.xpose.msra.mxu1 %v1663_v21  ;;  %v1205_v21 = vpop.permute.xlu0 %1204 }
 0x424   : > { %v1662_v18 = vmul.f32 %v1646_v52, %v1630_v15  ;;  %v1280_v52 = vmul.f32 0.0, %v1215_v31  ;;  %v1637_v15 = vld [vmem:[#allocation11 + $0x20] sm:$0xff] }
 0x425   : > { %v1600_v25 = vpop.permute.xlu1 %1599 }
 0x426   : > { %v1629_v59 = vmul.f32 %v1600_v25, %v1450_v33  ;;  %1964 = vmatprep.subr.mxu1 %v1662_v18  ;;  %v1636_v25 = vld [vmem:[#allocation11 + $0x18] sm:$0xff] }
 0x427   : > { %1965 = vmatpush3.xpose.msra.mxu1 %v1662_v18  ;;  %v1279_v18 = vmul.f32 0.0, %v1210_v34  ;;  %v1200_v19 = vpop.permute.xlu0 %1199 }
 0x428   : > { %v1661_v8 = vmul.f32 %v1645_v58, %v1629_v59  ;;  %v1441_v58 = vadd.f32 %v3202_v55, %v1280_v52 }
 0x429   : > { %v1595_v12 = vpop.permute.xlu1 %1594  ;;  %v1440_v3 = vadd.f32 %v3197_v41, %v1279_v18 }
 0x42a   : > { %v1628_v51 = vmul.f32 %v1595_v12, %v1449_v5  ;;  %1966 = vmatprep.subr.mxu1 %v1661_v8  ;;  %v1277_v5 = vmul.f32 0.0, %v1200_v19  ;;  %v1635_v12 = vld [vmem:[#allocation11 + $0x10] sm:$0xff] }
 0x42b   : > { %1967 = vmatpush3.xpose.msra.mxu1 %v1661_v8  ;;  %v1278_v8 = vmul.f32 0.0, %v1205_v21 }
 0x42c   : > { %v1660_v20 = vmul.f32 %v1644_v37, %v1628_v51 }
 0x42d   : > { %v1590_v6 = vpop.permute.xlu1 %1589 }
 0x42e   : > { %v1627_v63 = vmul.f32 %v1590_v6, %v1448_v57  ;;  %1968 = vmatprep.subr.mxu1 %v1660_v20  ;;  %v1439_v57 = vadd.f32 %v3192_v16, %v1278_v8  ;;  %v1668_v16 = vld [vmem:[#allocation10 + $0x18] sm:$0xff] }
 0x42f   : > { %1969 = vmatpush3.xpose.msra.mxu1 %v1660_v20  ;;  %v1438_v20 = vadd.f32 %v3190_v11, %v1277_v5  ;;  %v1667_v11 = vld [vmem:[#allocation10 + $0x10] sm:$0xff] }
 0x430   : > { %v1659_v62 = vmul.f32 %v1643_v24, %v1627_v63  ;;  %v1634_v24 = vld [vmem:[#allocation11 + $0x8] sm:$0xff] }
 0x431   : > { %v1585_v28 = vpop.permute.xlu1 %1584 }
 0x432   : > { %v1626_v47 = vmul.f32 %v1585_v28, %v1447_v10  ;;  %1970 = vmatprep.subr.mxu1 %v1659_v62 }
 0x433   : > { %1971 = vmatpush3.xpose.msra.mxu1 %v1659_v62  ;;  %v1633_v62 = vld [vmem:[#allocation11] sm:$0xff] }
 0x434   : > { %v1658_v45 = vmul.f32 %v1642_v39, %v1626_v47 }
 0x435   : > { %v1580_v22 = vpop.permute.xlu1 %1579 }
 0x436   : > { %v1625_v9 = vmul.f32 %v1580_v22, %v1446_v49  ;;  %1972 = vmatprep.subr.mxu1 %v1658_v45  ;;  %v1540_v26 = vpop.permute.xlu0 %1539 }
 0x437   : > { %1973 = vmatpush3.xpose.msra.mxu1 %v1658_v45  ;;  %v1617_v63 = vmul.f32 %v1540_v26, %v1438_v20 }
 0x438   : > { %v1657_v32 = vmul.f32 %v1641_v30, %v1625_v9 }
 0x439   : > { %v1575_v43 = vpop.permute.xlu1 %1574  ;;  %v1649_v10 = vmul.f32 %v1633_v62, %v1617_v63 }
 0x43a   : > { %v1624_v36 = vmul.f32 %v1575_v43, %v1445_v1  ;;  %1974 = vmatprep.subr.mxu1 %v1657_v32 }
 0x43b   : > { %1975 = vmatpush3.xpose.msra.mxu1 %v1657_v32 }
 0x43c   : > { %v1656_v42 = vmul.f32 %v1640_v38, %v1624_v36 }
 0x43d   : > { %v1570_v44 = vpop.permute.xlu1 %1569 }
 0x43e   : > { %v1623_v61 = vmul.f32 %v1570_v44, %v1444_v13  ;;  %1976 = vmatprep.subr.mxu1 %v1656_v42 }
 0x43f   : > { %1977 = vmatpush3.xpose.msra.mxu1 %v1656_v42 }
 0x440   : > { %v1655_v2 = vmul.f32 %v1639_v23, %v1623_v61 }
 0x441   : > { %v1565_v27 = vpop.permute.xlu1 %1564 }
 0x442   : > { %v1622_v14 = vmul.f32 %v1565_v27, %v1443_v48  ;;  %1978 = vmatprep.subr.mxu1 %v1655_v2 }
 0x443   : > { %1979 = vmatpush3.xpose.msra.mxu1 %v1655_v2 }
 0x444   : > { %v1654_v54 = vmul.f32 %v1638_v50, %v1622_v14 }
 0x445   : > { %v1560_v33 = vpop.permute.xlu1 %1559 }
 0x446   : > { %v1621_v56 = vmul.f32 %v1560_v33, %v1442_v53  ;;  %1980 = vmatprep.subr.mxu1 %v1654_v54 }
 0x447   : > { %1981 = vmatpush3.xpose.msra.mxu1 %v1654_v54 }
 0x448   : > { %v1653_v4 = vmul.f32 %v1637_v15, %v1621_v56 }
 0x449   : > { %v1555_v59 = vpop.permute.xlu1 %1554 }
 0x44a   : > { %v1620_v7 = vmul.f32 %v1555_v59, %v1441_v58  ;;  %1982 = vmatprep.subr.mxu1 %v1653_v4 }
 0x44b   : > { %1983 = vmatpush3.xpose.msra.mxu1 %v1653_v4 }
 0x44c   : > { %v1652_v37 = vmul.f32 %v1636_v25, %v1620_v7 }
 0x44d   : > { %v1550_v51 = vpop.permute.xlu1 %1549 }
 0x44e   : > { %v1619_v35 = vmul.f32 %v1550_v51, %v1440_v3  ;;  %1984 = vmatprep.subr.mxu1 %v1652_v37 }
 0x44f   : > { %1985 = vmatpush3.xpose.msra.mxu1 %v1652_v37 }
 0x450   : > { %v1651_v55 = vmul.f32 %v1635_v12, %v1619_v35 }
 0x451   : > { %v1545_v6 = vpop.permute.xlu1 %1544 }
 0x452   : > { %v1618_v17 = vmul.f32 %v1545_v6, %v1439_v57  ;;  %1986 = vmatprep.subr.mxu1 %v1651_v55 }
 0x453   : > { %1987 = vmatpush3.xpose.msra.mxu1 %v1651_v55 }
 0x454   : > { %v1650_v41 = vmul.f32 %v1634_v24, %v1618_v17 }
 0x456   : > { %1988 = vmatprep.subr.mxu1 %v1650_v41 }
 0x457   : > { %1989 = vmatpush3.xpose.msra.mxu1 %v1650_v41 }
 0x458   : > { %1990 = vmatprep.subr.mxu1 %v1649_v10 }
 0x45b   : > { %1991 = vmatpush3.xpose.msra.mxu1 %v1649_v10 }
 0x45e   : > { %1993 = vmatmul.mubr.f32.vlgmr.msra.gmra.mxu1 %v1666_v0 }
 0x45f   : > { %1995 = vmatprep.mubr.f32.mxu1 %v1667_v11 }
 0x462   : > { %1996 = vmatmul.mubr.f32.gmra.mxu1 %v1668_v16 }
 0x51e   : > { %v1994_v39 = vpop.f32.mrf.mxu1 }
 0x51f   : > { %1755 = vst [vmem:[%s275_s25 + $0x8] sm:$0xff] %v1994_v39 }
 0x520   : > { %v1735_v28 = vpop.f32.mrf.mxu1 }
 0x521   : > { %1754 = vst [vmem:[%s275_s25] sm:$0xff] %v1735_v28 }
 0x522   : > { %v1997_v47 = vpop.f32.mrf.mxu1 }
 0x523   : > { %1757 = vst [vmem:[%s275_s25 + $0x18] sm:$0xff] %v1997_v47 }
 0x524   : > { %v1745_v60 = vpop.f32.mrf.mxu1 }
 0x525   : > { %1756 = vst [vmem:[%s275_s25 + $0x10] sm:$0xff] %v1745_v60 }
 0x526   : > { %2349 = shalt.err (!%p2346_p2)
}
 0x527   : > { %s2350_s30 = scalar_lea.hbm %s3269_s10, 512  ;;  %s2354_s29 = scalar_lea.hbm %s3321_s4, 1024 }
 0x528   : > { %p2351_p7 = scmp.ne.s32.totalorder %s3269_s10, %s2350_s30  ;;  %p2355_p13 = scmp.lt.s32.totalorder %s3269_s10, %s3321_s4 }
 0x529   : > { %p2356_p0 = scmp.lt.s32.totalorder %s2354_s29, %s2350_s30 }
 0x52a   : > { %p2352_p9 = pnand %p2351_p7, %p3393_p4 }
 0x52b   : > { %p2357_p3 = por %p2356_p0, %p2355_p13 }
 0x52c   : > { %p2353_p12 = pneg %p2352_p9 }
 0x52e   : > { %p2358_p1 = pnand %p2357_p3, %p2353_p12 }
 0x530   : > { %2361 = shalt.err (!%p2358_p1)
}
 0x531   : > { %s2438_s25 = smov 128   ;;  %s2439_s8 = smov 8  }
 0x532   : > { %2012 = dma.vmem_to_hbm [thread:$0]  (%p3393_p4), %s3264_s27, 512, %s3269_s10, %s1759_s24, %s2438_s25, %s2438_s25, %s2439_s8  }
 0x533 PF: > { %s1787_s9 = sand.u32 1, %s2404_s15   ;;  %p3394_p6 = scmp.ne.s32.totalorder %s3342_s26, 0 }
 0x534   : > { %p3395_p8 = scmp.ge.s32.totalorder %s2424_s20, 2  ;;  %s1788_s7 = scalar_lea.sflag [#allocation7], %s1787_s9 }
 0x536   : > { %p2029_p10 = pnand %p3395_p8, %p3394_p6 }
 0x538   : > { %p2030_p5 = pneg %p2029_p10 }
 0x53a   : > { %2399 = dma.done.wait (%p2030_p5), %s1788_s7, 512  }
 0x53b   : > { %2401 = vsyncadd (%p2030_p5), %s1788_s7, 4294966784  ;;  %s22_s20 = sadd.s32 1, %s2424_s20   ;;  %s3396_s15 = smov %s2408_s16 }
 0x53c   : > { %p19_p11 = scmp.ge.s32.totalorder %s22_s20, 4   ;;  %s3397_s16 = smov %s2412_s17 }
 0x53d   : > { %s3398_s17 = smov %s2583_s22  ;;  %s3399_s18 = smov %s2420_s19 }
 0x53e   : > { %s3400_s19 = smov %s3402_s6  ;;  %21 = sbr.rel (!%p19_p11) target bundleno = 10 (0xa), region = 101 }
 0x543   :  { %1793 = vsyncpa [#allocation6], 1 }
 0x544   :  { %1795 = vsyncpa [#allocation6 + $0x1], 1 }
 0x545   :  { %1796 = vsyncpa [#allocation9], 1 }
 0x546   :  { %1797 = vsyncpa [#allocation12], 1 }
 0x547   :  { %1798 = vsyncpa [#allocation7], 1 }
 0x548   :  { %1800 = vsyncpa [#allocation7 + $0x1], 1 }

</bundles_post_ra>
